<compile_context>
chip_gen: v5e
topology: v5e:2x2
jax: 0.10.0
libtpu: 0.0.40
codegen_flags: <defaults>
</compile_context>

<pallas_src>
import functools

import jax
import jax.numpy as jnp
from jax import lax
from jax.experimental import pallas as pl
from jax.experimental.pallas import tpu as pltpu


def _round_up(x, m):
    return ((x + m - 1) // m) * m


# ---------------------------------------------------------------------------
# Fused kernel: conv (stride-1 TxT over space-to-depth input) + BN + ReLU + pool
# ---------------------------------------------------------------------------
def stem_fused_kernel(x_ref, w_ref, scale_ref, shift_ref, o_ref, pool_sc, *,
                      T, CS, OH, OW, POW, TPOH, Cp):
    # x_ref:     (1, HSp, WS, CS)      bf16  space-to-depth input (+1 zero halo row)
    # w_ref:     (Kd, Cp)              bf16  rearranged conv weights
    # scale_ref: (1, Cp)               f32   folded BN scale
    # shift_ref: (1, Cp)               f32   folded BN shift (+ conv bias)
    # o_ref:     (1, TPOH, POW, Cp)    f32   pooled output rows owned by this chunk
    # pool_sc:   (TPOH, OWe + 1, Cp)   f32   VMEM scratch for column pooling
    CR = 2 * TPOH            # conv rows whose pooled result this chunk owns
    CRH = CR + 1             # + 1 halo conv row above (conv row r0 - 1)
    OWe = 2 * POW
    Kd = T * T * CS

    c = pl.program_id(1)
    r0 = c * CR              # first body conv row of this chunk
    # Wrapper prepends one zero s2d row, so conv row r reads s2d rows (r+1)..(r+T);
    # this chunk starts at conv row (r0 - 1)  ->  s2d row start = r0.
    row_start = r0

    # ---- conv + folded BN + ReLU over CRH rows (patches assembled in VMEM only) ----
    taps = []
    for r in range(T):
        for ct in range(T):
            taps.append(x_ref[0, pl.ds(row_start + r, CRH), ct:ct + OW, :])
    patches = jnp.concatenate(taps, axis=-1).reshape(CRH * OW, Kd)
    acc = jnp.dot(patches, w_ref[...], preferred_element_type=jnp.float32)   # MXU
    y = acc * scale_ref[...] + shift_ref[...]
    h = jnp.maximum(y, 0.0).reshape(CRH, OW, Cp)

    # Conv rows outside [0, OH) act as maxpool padding.  Zero is a safe stand-in for
    # the reference's -inf padding ONLY because ReLU precedes the pool (h >= 0).
    r_idx = r0 - 1 + lax.broadcasted_iota(jnp.int32, (CRH, 1, 1), 0)
    h = jnp.where((r_idx >= 0) & (r_idx < OH), h, 0.0)

    # ---- row pooling: pooled row p = max(conv rows 2p-1, 2p, 2p+1) ------------------
    # Leading-axis reshapes / selects only (free vreg regrouping), then 2 VPU maxes.
    top_mid = h[0:CR].reshape(TPOH, 2, OW, Cp)          # [:,0]=rows 2p-1, [:,1]=rows 2p
    bot = h[1:CRH].reshape(TPOH, 2, OW, Cp)[:, 1]       # rows 2p+1
    rm = jnp.maximum(jnp.maximum(top_mid[:, 0], top_mid[:, 1]), bot)   # (TPOH, OW, Cp)

    # ---- column pooling via a 1-column-left-padded VMEM scratch ---------------------
    # Scratch column j holds conv column (j - 1); column 0 (and the last column when
    # OW is odd) is the zero pool padding.
    zero_col = jnp.zeros((TPOH, 1, Cp), jnp.float32)
    pool_sc[:, 0:1, :] = zero_col
    if OWe != OW:                                       # odd OW: conv col OW is padding
        pool_sc[:, OWe:OWe + 1, :] = zero_col
    pool_sc[:, 1:1 + OW, :] = rm
    cm1 = pool_sc[:, pl.ds(0, POW, stride=2), :]        # conv cols 2q-1
    ce = pool_sc[:, pl.ds(1, POW, stride=2), :]         # conv cols 2q
    co = pool_sc[:, pl.ds(2, POW, stride=2), :]         # conv cols 2q+1
    o_ref[0] = jnp.maximum(jnp.maximum(ce, co), cm1)


# ---------------------------------------------------------------------------
# Wrapper: layout plumbing, space-to-depth, parameter folding, pallas_call
# ---------------------------------------------------------------------------
def stem_block_forward(x_nchw, params, *, kernel_size=7, stride=2, eps=1e-5):
    w = params["weight"]          # (Cout, Cin, K, K)  PyTorch OIHW
    b = params["bias"]
    gamma = params["gamma"]
    beta = params["beta"]
    r_mean = params["running_mean"]
    r_var = params["running_var"]

    N, Cin, H, W = x_nchw.shape
    Cout = w.shape[0]
    K, S = kernel_size, stride
    P = (K - 1) // 2

    OH = (H + 2 * P - K) // S + 1
    OW = (W + 2 * P - K) // S + 1
    POH = (OH - 1) // 2 + 1               # maxpool(kernel=3, stride=2, padding=1)
    POW = (OW - 1) // 2 + 1
    OHe, OWe = 2 * POH, 2 * POW

    T = -(-K // S)                        # ceil(K/S): taps per dim after s2d
    KS = T * S                            # weight zero-padded to KS x KS
    Cin_p = Cin
    while (S * S * Cin_p) % 8:            # clean sublane-sized per-tap channel slab
        Cin_p += 1
    CS = S * S * Cin_p                    # space-to-depth channel count
    Kd = T * T * CS                       # matmul contraction dim
    Cp = max(128, _round_up(Cout, 128))   # lane-dense output channels

    # ---- space-to-depth input: stride-S conv -> stride-1 TxT conv -----------------
    HS = OHe + T - 1                      # rows needed for conv rows 0 .. OHe-1
    WS = OW + T - 1
    x = jnp.transpose(x_nchw, (0, 2, 3, 1))                        # NHWC
    if Cin_p != Cin:
        x = jnp.pad(x, ((0, 0), (0, 0), (0, 0), (0, Cin_p - Cin)))
    pad_hb = HS * S - H - P
    pad_wb = WS * S - W - P
    assert pad_hb >= 0 and pad_wb >= 0
    xp = jnp.pad(x, ((0, 0), (P, pad_hb), (P, pad_wb), (0, 0)))
    xs = xp.reshape(N, HS, S, WS, S, Cin_p)
    xs = jnp.transpose(xs, (0, 1, 3, 2, 4, 5)).reshape(N, HS, WS, CS)
    xs = jnp.pad(xs, ((0, 0), (1, 0), (0, 0), (0, 0)))             # halo row (conv row -1)
    xs = xs.astype(jnp.bfloat16)                                   # bf16 MXU operand
    HSp = HS + 1

    # ---- rearranged weights + folded eval-mode BatchNorm affine -------------------
    wp = jnp.pad(w, ((0, 0), (0, Cin_p - Cin), (0, KS - K), (0, KS - K)))
    w6 = wp.reshape(Cout, Cin_p, T, S, T, S)
    w2d = jnp.transpose(w6, (2, 4, 3, 5, 1, 0)).reshape(Kd, Cout)  # (r,c,ph,pw,ci) x co
    w2d = jnp.pad(w2d, ((0, 0), (0, Cp - Cout))).astype(jnp.bfloat16)

    scale = gamma / jnp.sqrt(r_var + eps)
    shift = beta + (b - r_mean) * scale
    scale2d = jnp.pad(scale.astype(jnp.float32), (0, Cp - Cout)).reshape(1, Cp)
    shift2d = jnp.pad(shift.astype(jnp.float32), (0, Cp - Cout)).reshape(1, Cp)

    # ---- chunking over pooled rows: ~<= 2048 conv pixels per in-kernel matmul ------
    TPOH = 1
    for d in range(POH, 0, -1):
        if POH % d == 0 and 2 * d * OW <= 2048:
            TPOH = d
            break
    n_chunks = POH // TPOH

    cost = pl.CostEstimate(
        flops=2 * N * n_chunks * (2 * TPOH + 1) * OW * Kd * Cp,
        transcendentals=0,
        bytes_accessed=int(xs.size * 2 + w2d.size * 2 + 2 * Cp * 4
                           + N * POH * POW * Cp * 4))

    pooled = pl.pallas_call(
        functools.partial(stem_fused_kernel, T=T, CS=CS, OH=OH, OW=OW,
                          POW=POW, TPOH=TPOH, Cp=Cp),
        out_shape=jax.ShapeDtypeStruct((N, POH, POW, Cp), jnp.float32),
        grid=(N, n_chunks),
        in_specs=[pl.BlockSpec((1, HSp, WS, CS), lambda n, c: (n, 0, 0, 0)),
                  pl.BlockSpec((Kd, Cp), lambda n, c: (0, 0)),
                  pl.BlockSpec((1, Cp), lambda n, c: (0, 0)),
                  pl.BlockSpec((1, Cp), lambda n, c: (0, 0))],
        out_specs=pl.BlockSpec((1, TPOH, POW, Cp), lambda n, c: (n, c, 0, 0)),
        scratch_shapes=[pltpu.VMEM((TPOH, OWe + 1, Cp), jnp.float32)],
        compiler_params=pltpu.CompilerParams(
            dimension_semantics=("parallel", "parallel"),
            vmem_limit_bytes=32 * 1024 * 1024),      # <= v7x scoped default
        cost_estimate=cost,
    )(xs, w2d, scale2d, shift2d)

    # TODO(synk): a full ResNet would feed the lane-dense NHWC / Cp=128 layout (and
    # optionally bf16) straight into res2; the slice + NCHW transpose below is only
    # to match the PyTorch module's output contract.
    out = pooled[:, :, :, :Cout]
    return jnp.transpose(out, (0, 3, 1, 2))          # back to NCHW


# ---------------------------------------------------------------------------
# Deterministic parameter init (mirrors StemBlock.__init__)
# ---------------------------------------------------------------------------
def init_params(key, in_channels, out_channels, kernel_size=7):
    k_w, k_g, k_b, k_m, k_v = jax.random.split(key, 5)
    fan_in = in_channels * kernel_size * kernel_size
    std = (2.0 / fan_in) ** 0.5   # kaiming_normal_(nonlinearity='relu'), fan_in mode
    weight = std * jax.random.normal(
        k_w, (out_channels, in_channels, kernel_size, kernel_size), jnp.float32)
    bias = jnp.zeros((out_channels,), jnp.float32)     # nn.init.constant_(bias, 0)
    gamma = 0.5 + jax.random.uniform(k_g, (out_channels,), jnp.float32)
    beta = 0.1 * jax.random.normal(k_b, (out_channels,), jnp.float32)
    running_mean = 0.1 * jax.random.normal(k_m, (out_channels,), jnp.float32)
    running_var = 0.5 + jax.random.uniform(k_v, (out_channels,), jnp.float32)
    return dict(weight=weight, bias=bias, gamma=gamma, beta=beta,
                running_mean=running_mean, running_var=running_var)


# ---------------------------------------------------------------------------
# Pure-JAX reference (for correctness check only)
# ---------------------------------------------------------------------------
def stem_block_reference(x, params, eps=1e-5):
    w, b = params["weight"], params["bias"]
    gamma, beta = params["gamma"], params["beta"]
    r_mean, r_var = params["running_mean"], params["running_var"]
    y = lax.conv_general_dilated(
        x, w, window_strides=(2, 2), padding=((3, 3), (3, 3)),
        dimension_numbers=("NCHW", "OIHW", "NCHW"))
    scale = gamma / jnp.sqrt(r_var + eps)
    shift = beta + (b - r_mean) * scale
    y = y * scale[None, :, None, None] + shift[None, :, None, None]
    y = jnp.maximum(y, 0.0)
    y = lax.reduce_window(y, -jnp.inf, lax.max,
                          window_dimensions=(1, 1, 3, 3),
                          window_strides=(1, 1, 2, 2),
                          padding=((0, 0), (0, 0), (1, 1), (1, 1)))
    return y


if __name__ == "__main__":
    key = jax.random.PRNGKey(0)
    k_x, k_p = jax.random.split(key)

    N, Cin, H, W = 2, 4, 16, 16
    Cout = 8
    x = jax.random.normal(k_x, (N, Cin, H, W), jnp.float32)
    params = init_params(k_p, Cin, Cout, kernel_size=7)

    out = stem_block_forward(x, params)
    out = jax.block_until_ready(out)

    assert out.shape == (N, Cout, 4, 4), out.shape
    ref = stem_block_reference(x, params)
    # bf16 MXU operands (f32 accumulate) by design -> compare against the full-f32
    # reference with a bf16-appropriate tolerance.
    if not bool(jnp.allclose(out, ref, atol=5e-2, rtol=5e-2)):
        raise AssertionError("Pallas StemBlock output mismatch vs reference")

    print("KERNEL_OK")
</pallas_src>

<mosaic_0001>
module attributes {stable_mosaic.version = 11 : i64} {
  func.func @stem_fused_kernel(%arg0: i32, %arg1: i32, %arg2: memref<1x12x11x16xbf16, #tpu.memory_space<vmem>>, %arg3: memref<256x128xbf16, #tpu.memory_space<vmem>>, %arg4: memref<1x128xf32, #tpu.memory_space<vmem>>, %arg5: memref<1x128xf32, #tpu.memory_space<vmem>>, %arg6: memref<1x4x4x128xf32, #tpu.memory_space<vmem>>, %arg7: memref<4x9x128xf32, #tpu.memory_space<vmem>>) attributes {dimension_semantics = [#tpu.dimension_semantics<parallel>, #tpu.dimension_semantics<parallel>], iteration_bounds = array<i64: 2, 1>, scalar_prefetch = 0 : i64, scratch_operands = 1 : i64, tpu.core_type = #tpu.core_type<tc>, window_params = [{transform_indices = @transform_0, window_bounds = array<i64: 1, 12, 11, 16>}, {pipeline_mode = #tpu.pipeline_mode<synchronous>, transform_indices = @transform_1, window_bounds = array<i64: 256, 128>}, {pipeline_mode = #tpu.pipeline_mode<synchronous>, transform_indices = @transform_2, window_bounds = array<i64: 1, 128>}, {pipeline_mode = #tpu.pipeline_mode<synchronous>, transform_indices = @transform_3, window_bounds = array<i64: 1, 128>}, {transform_indices = @transform_4, window_bounds = array<i64: 1, 4, 4, 128>}]} {
    %c8_i32 = arith.constant 8 : i32
    %0 = arith.muli %arg1, %c8_i32 : i32
    %c0_i32 = arith.constant 0 : i32
    %1 = arith.addi %0, %c0_i32 : i32
    %c0 = arith.constant 0 : index
    %2 = arith.index_cast %1 : i32 to index
    %c0_0 = arith.constant 0 : index
    %c0_1 = arith.constant 0 : index
    %3 = vector.load %arg2[%c0, %2, %c0_0, %c0_1] : memref<1x12x11x16xbf16, #tpu.memory_space<vmem>>, vector<1x9x8x16xbf16>
    %4 = vector.shape_cast %3 : vector<1x9x8x16xbf16> to vector<9x8x16xbf16>
    %c0_i32_2 = arith.constant 0 : i32
    %5 = arith.addi %0, %c0_i32_2 : i32
    %c0_3 = arith.constant 0 : index
    %6 = arith.index_cast %5 : i32 to index
    %c1 = arith.constant 1 : index
    %c0_4 = arith.constant 0 : index
    %7 = vector.load %arg2[%c0_3, %6, %c1, %c0_4] : memref<1x12x11x16xbf16, #tpu.memory_space<vmem>>, vector<1x9x8x16xbf16>
    %8 = vector.shape_cast %7 : vector<1x9x8x16xbf16> to vector<9x8x16xbf16>
    %c0_i32_5 = arith.constant 0 : i32
    %9 = arith.addi %0, %c0_i32_5 : i32
    %c0_6 = arith.constant 0 : index
    %10 = arith.index_cast %9 : i32 to index
    %c2 = arith.constant 2 : index
    %c0_7 = arith.constant 0 : index
    %11 = vector.load %arg2[%c0_6, %10, %c2, %c0_7] : memref<1x12x11x16xbf16, #tpu.memory_space<vmem>>, vector<1x9x8x16xbf16>
    %12 = vector.shape_cast %11 : vector<1x9x8x16xbf16> to vector<9x8x16xbf16>
    %c0_i32_8 = arith.constant 0 : i32
    %13 = arith.addi %0, %c0_i32_8 : i32
    %c0_9 = arith.constant 0 : index
    %14 = arith.index_cast %13 : i32 to index
    %c3 = arith.constant 3 : index
    %c0_10 = arith.constant 0 : index
    %15 = vector.load %arg2[%c0_9, %14, %c3, %c0_10] : memref<1x12x11x16xbf16, #tpu.memory_space<vmem>>, vector<1x9x8x16xbf16>
    %16 = vector.shape_cast %15 : vector<1x9x8x16xbf16> to vector<9x8x16xbf16>
    %c1_i32 = arith.constant 1 : i32
    %17 = arith.addi %0, %c1_i32 : i32
    %c0_11 = arith.constant 0 : index
    %18 = arith.index_cast %17 : i32 to index
    %c0_12 = arith.constant 0 : index
    %c0_13 = arith.constant 0 : index
    %19 = vector.load %arg2[%c0_11, %18, %c0_12, %c0_13] : memref<1x12x11x16xbf16, #tpu.memory_space<vmem>>, vector<1x9x8x16xbf16>
    %20 = vector.shape_cast %19 : vector<1x9x8x16xbf16> to vector<9x8x16xbf16>
    %c1_i32_14 = arith.constant 1 : i32
    %21 = arith.addi %0, %c1_i32_14 : i32
    %c0_15 = arith.constant 0 : index
    %22 = arith.index_cast %21 : i32 to index
    %c1_16 = arith.constant 1 : index
    %c0_17 = arith.constant 0 : index
    %23 = vector.load %arg2[%c0_15, %22, %c1_16, %c0_17] : memref<1x12x11x16xbf16, #tpu.memory_space<vmem>>, vector<1x9x8x16xbf16>
    %24 = vector.shape_cast %23 : vector<1x9x8x16xbf16> to vector<9x8x16xbf16>
    %c1_i32_18 = arith.constant 1 : i32
    %25 = arith.addi %0, %c1_i32_18 : i32
    %c0_19 = arith.constant 0 : index
    %26 = arith.index_cast %25 : i32 to index
    %c2_20 = arith.constant 2 : index
    %c0_21 = arith.constant 0 : index
    %27 = vector.load %arg2[%c0_19, %26, %c2_20, %c0_21] : memref<1x12x11x16xbf16, #tpu.memory_space<vmem>>, vector<1x9x8x16xbf16>
    %28 = vector.shape_cast %27 : vector<1x9x8x16xbf16> to vector<9x8x16xbf16>
    %c1_i32_22 = arith.constant 1 : i32
    %29 = arith.addi %0, %c1_i32_22 : i32
    %c0_23 = arith.constant 0 : index
    %30 = arith.index_cast %29 : i32 to index
    %c3_24 = arith.constant 3 : index
    %c0_25 = arith.constant 0 : index
    %31 = vector.load %arg2[%c0_23, %30, %c3_24, %c0_25] : memref<1x12x11x16xbf16, #tpu.memory_space<vmem>>, vector<1x9x8x16xbf16>
    %32 = vector.shape_cast %31 : vector<1x9x8x16xbf16> to vector<9x8x16xbf16>
    %c2_i32 = arith.constant 2 : i32
    %33 = arith.addi %0, %c2_i32 : i32
    %c0_26 = arith.constant 0 : index
    %34 = arith.index_cast %33 : i32 to index
    %c0_27 = arith.constant 0 : index
    %c0_28 = arith.constant 0 : index
    %35 = vector.load %arg2[%c0_26, %34, %c0_27, %c0_28] : memref<1x12x11x16xbf16, #tpu.memory_space<vmem>>, vector<1x9x8x16xbf16>
    %36 = vector.shape_cast %35 : vector<1x9x8x16xbf16> to vector<9x8x16xbf16>
    %c2_i32_29 = arith.constant 2 : i32
    %37 = arith.addi %0, %c2_i32_29 : i32
    %c0_30 = arith.constant 0 : index
    %38 = arith.index_cast %37 : i32 to index
    %c1_31 = arith.constant 1 : index
    %c0_32 = arith.constant 0 : index
    %39 = vector.load %arg2[%c0_30, %38, %c1_31, %c0_32] : memref<1x12x11x16xbf16, #tpu.memory_space<vmem>>, vector<1x9x8x16xbf16>
    %40 = vector.shape_cast %39 : vector<1x9x8x16xbf16> to vector<9x8x16xbf16>
    %c2_i32_33 = arith.constant 2 : i32
    %41 = arith.addi %0, %c2_i32_33 : i32
    %c0_34 = arith.constant 0 : index
    %42 = arith.index_cast %41 : i32 to index
    %c2_35 = arith.constant 2 : index
    %c0_36 = arith.constant 0 : index
    %43 = vector.load %arg2[%c0_34, %42, %c2_35, %c0_36] : memref<1x12x11x16xbf16, #tpu.memory_space<vmem>>, vector<1x9x8x16xbf16>
    %44 = vector.shape_cast %43 : vector<1x9x8x16xbf16> to vector<9x8x16xbf16>
    %c2_i32_37 = arith.constant 2 : i32
    %45 = arith.addi %0, %c2_i32_37 : i32
    %c0_38 = arith.constant 0 : index
    %46 = arith.index_cast %45 : i32 to index
    %c3_39 = arith.constant 3 : index
    %c0_40 = arith.constant 0 : index
    %47 = vector.load %arg2[%c0_38, %46, %c3_39, %c0_40] : memref<1x12x11x16xbf16, #tpu.memory_space<vmem>>, vector<1x9x8x16xbf16>
    %48 = vector.shape_cast %47 : vector<1x9x8x16xbf16> to vector<9x8x16xbf16>
    %c3_i32 = arith.constant 3 : i32
    %49 = arith.addi %0, %c3_i32 : i32
    %c0_41 = arith.constant 0 : index
    %50 = arith.index_cast %49 : i32 to index
    %c0_42 = arith.constant 0 : index
    %c0_43 = arith.constant 0 : index
    %51 = vector.load %arg2[%c0_41, %50, %c0_42, %c0_43] : memref<1x12x11x16xbf16, #tpu.memory_space<vmem>>, vector<1x9x8x16xbf16>
    %52 = vector.shape_cast %51 : vector<1x9x8x16xbf16> to vector<9x8x16xbf16>
    %c3_i32_44 = arith.constant 3 : i32
    %53 = arith.addi %0, %c3_i32_44 : i32
    %c0_45 = arith.constant 0 : index
    %54 = arith.index_cast %53 : i32 to index
    %c1_46 = arith.constant 1 : index
    %c0_47 = arith.constant 0 : index
    %55 = vector.load %arg2[%c0_45, %54, %c1_46, %c0_47] : memref<1x12x11x16xbf16, #tpu.memory_space<vmem>>, vector<1x9x8x16xbf16>
    %56 = vector.shape_cast %55 : vector<1x9x8x16xbf16> to vector<9x8x16xbf16>
    %c3_i32_48 = arith.constant 3 : i32
    %57 = arith.addi %0, %c3_i32_48 : i32
    %c0_49 = arith.constant 0 : index
    %58 = arith.index_cast %57 : i32 to index
    %c2_50 = arith.constant 2 : index
    %c0_51 = arith.constant 0 : index
    %59 = vector.load %arg2[%c0_49, %58, %c2_50, %c0_51] : memref<1x12x11x16xbf16, #tpu.memory_space<vmem>>, vector<1x9x8x16xbf16>
    %60 = vector.shape_cast %59 : vector<1x9x8x16xbf16> to vector<9x8x16xbf16>
    %c3_i32_52 = arith.constant 3 : i32
    %61 = arith.addi %0, %c3_i32_52 : i32
    %c0_53 = arith.constant 0 : index
    %62 = arith.index_cast %61 : i32 to index
    %c3_54 = arith.constant 3 : index
    %c0_55 = arith.constant 0 : index
    %63 = vector.load %arg2[%c0_53, %62, %c3_54, %c0_55] : memref<1x12x11x16xbf16, #tpu.memory_space<vmem>>, vector<1x9x8x16xbf16>
    %64 = vector.shape_cast %63 : vector<1x9x8x16xbf16> to vector<9x8x16xbf16>
    %65 = tpu.concatenate %4, %8, %12, %16, %20, %24, %28, %32, %36, %40, %44, %48, %52, %56, %60, %64 in 2 : vector<9x8x16xbf16>, vector<9x8x16xbf16>, vector<9x8x16xbf16>, vector<9x8x16xbf16>, vector<9x8x16xbf16>, vector<9x8x16xbf16>, vector<9x8x16xbf16>, vector<9x8x16xbf16>, vector<9x8x16xbf16>, vector<9x8x16xbf16>, vector<9x8x16xbf16>, vector<9x8x16xbf16>, vector<9x8x16xbf16>, vector<9x8x16xbf16>, vector<9x8x16xbf16>, vector<9x8x16xbf16> -> vector<9x8x256xbf16>
    %66 = vector.shape_cast %65 : vector<9x8x256xbf16> to vector<72x256xbf16>
    %c0_56 = arith.constant 0 : index
    %c0_57 = arith.constant 0 : index
    %67 = vector.load %arg3[%c0_56, %c0_57] : memref<256x128xbf16, #tpu.memory_space<vmem>>, vector<256x128xbf16>
    %cst = arith.constant dense<0.000000e+00> : vector<72x128xf32>
    %68 = tpu.matmul %66, %67, %cst {dimension_numbers = #tpu.dot_dimension_numbers<[1], [0], [0], [1], [0, 0, 1, 1], [], []>} : vector<72x256xbf16>, vector<256x128xbf16>, vector<72x128xf32> -> vector<72x128xf32>
    %c0_58 = arith.constant 0 : index
    %c0_59 = arith.constant 0 : index
    %69 = vector.load %arg4[%c0_58, %c0_59] : memref<1x128xf32, #tpu.memory_space<vmem>>, vector<1x128xf32>
    %70 = vector.broadcast %69 : vector<1x128xf32> to vector<72x128xf32>
    %71 = arith.mulf %68, %70 : vector<72x128xf32>
    %c0_60 = arith.constant 0 : index
    %c0_61 = arith.constant 0 : index
    %72 = vector.load %arg5[%c0_60, %c0_61] : memref<1x128xf32, #tpu.memory_space<vmem>>, vector<1x128xf32>
    %73 = vector.broadcast %72 : vector<1x128xf32> to vector<72x128xf32>
    %74 = arith.addf %71, %73 : vector<72x128xf32>
    %cst_62 = arith.constant 0.000000e+00 : f32
    %75 = vector.broadcast %cst_62 : f32 to vector<72x128xf32>
    %76 = arith.maximumf %74, %75 : vector<72x128xf32>
    %77 = vector.shape_cast %76 : vector<72x128xf32> to vector<9x8x128xf32>
    %c1_i32_63 = arith.constant 1 : i32
    %78 = arith.subi %0, %c1_i32_63 : i32
    %79 = tpu.iota {dimensions = array<i32: 0>} : vector<9x1x1xi32>
    %80 = vector.broadcast %78 : i32 to vector<9x1x1xi32>
    %81 = arith.addi %80, %79 : vector<9x1x1xi32>
    %c0_i32_64 = arith.constant 0 : i32
    %82 = vector.broadcast %c0_i32_64 : i32 to vector<9x1x1xi32>
    %83 = arith.cmpi sge, %81, %82 : vector<9x1x1xi32>
    %c8_i32_65 = arith.constant 8 : i32
    %84 = vector.broadcast %c8_i32_65 : i32 to vector<9x1x1xi32>
    %85 = arith.cmpi slt, %81, %84 : vector<9x1x1xi32>
    %86 = arith.andi %83, %85 : vector<9x1x1xi1>
    %cst_66 = arith.constant 0.000000e+00 : f32
    %87 = vector.shape_cast %86 : vector<9x1x1xi1> to vector<9x1x1xi1>
    %88 = vector.broadcast %87 : vector<9x1x1xi1> to vector<9x8x128xi1>
    %89 = vector.broadcast %cst_66 : f32 to vector<9x8x128xf32>
    %90 = arith.select %88, %77, %89 : vector<9x8x128xi1>, vector<9x8x128xf32>
    %91 = vector.extract_strided_slice %90 {offsets = [0, 0, 0], sizes = [8, 8, 128], strides = [1, 1, 1]} : vector<9x8x128xf32> to vector<8x8x128xf32>
    %92 = vector.shape_cast %91 : vector<8x8x128xf32> to vector<4x2x8x128xf32>
    %93 = vector.extract_strided_slice %90 {offsets = [1, 0, 0], sizes = [8, 8, 128], strides = [1, 1, 1]} : vector<9x8x128xf32> to vector<8x8x128xf32>
    %94 = vector.shape_cast %93 : vector<8x8x128xf32> to vector<4x2x8x128xf32>
    %95 = vector.extract_strided_slice %94 {offsets = [0, 1, 0, 0], sizes = [4, 1, 8, 128], strides = [1, 1, 1, 1]} : vector<4x2x8x128xf32> to vector<4x1x8x128xf32>
    %96 = vector.shape_cast %95 : vector<4x1x8x128xf32> to vector<4x8x128xf32>
    %97 = vector.extract_strided_slice %92 {offsets = [0, 0, 0, 0], sizes = [4, 1, 8, 128], strides = [1, 1, 1, 1]} : vector<4x2x8x128xf32> to vector<4x1x8x128xf32>
    %98 = vector.shape_cast %97 : vector<4x1x8x128xf32> to vector<4x8x128xf32>
    %99 = vector.extract_strided_slice %92 {offsets = [0, 1, 0, 0], sizes = [4, 1, 8, 128], strides = [1, 1, 1, 1]} : vector<4x2x8x128xf32> to vector<4x1x8x128xf32>
    %100 = vector.shape_cast %99 : vector<4x1x8x128xf32> to vector<4x8x128xf32>
    %101 = arith.maximumf %98, %100 : vector<4x8x128xf32>
    %102 = arith.maximumf %101, %96 : vector<4x8x128xf32>
    %cst_67 = arith.constant 0.000000e+00 : f32
    %103 = vector.broadcast %cst_67 : f32 to vector<4x1x128xf32>
    %c0_68 = arith.constant 0 : index
    %c0_69 = arith.constant 0 : index
    %c0_70 = arith.constant 0 : index
    %104 = vector.load %arg7[%c0_68, %c0_69, %c0_70] : memref<4x9x128xf32, #tpu.memory_space<vmem>>, vector<4x1x128xf32>
    tpu.vector_store %arg7[%c0_68, %c0_69, %c0_70], %103 {strides = array<i32>} : memref<4x9x128xf32, #tpu.memory_space<vmem>>, vector<4x1x128xf32>,
    %c0_71 = arith.constant 0 : index
    %c1_72 = arith.constant 1 : index
    %c0_73 = arith.constant 0 : index
    %105 = vector.load %arg7[%c0_71, %c1_72, %c0_73] : memref<4x9x128xf32, #tpu.memory_space<vmem>>, vector<4x8x128xf32>
    tpu.vector_store %arg7[%c0_71, %c1_72, %c0_73], %102 {strides = array<i32>} : memref<4x9x128xf32, #tpu.memory_space<vmem>>, vector<4x8x128xf32>,
    %c0_74 = arith.constant 0 : index
    %c0_75 = arith.constant 0 : index
    %c0_76 = arith.constant 0 : index
    %106 = tpu.strided_load %arg7[%c0_74, %c0_75, %c0_76] {strides = array<i32: 1, 2, 1>} : memref<4x9x128xf32, #tpu.memory_space<vmem>>, vector<4x4x128xf32>
    %c0_77 = arith.constant 0 : index
    %c1_78 = arith.constant 1 : index
    %c0_79 = arith.constant 0 : index
    %107 = tpu.strided_load %arg7[%c0_77, %c1_78, %c0_79] {strides = array<i32: 1, 2, 1>} : memref<4x9x128xf32, #tpu.memory_space<vmem>>, vector<4x4x128xf32>
    %c0_80 = arith.constant 0 : index
    %c2_81 = arith.constant 2 : index
    %c0_82 = arith.constant 0 : index
    %108 = tpu.strided_load %arg7[%c0_80, %c2_81, %c0_82] {strides = array<i32: 1, 2, 1>} : memref<4x9x128xf32, #tpu.memory_space<vmem>>, vector<4x4x128xf32>
    %109 = arith.maximumf %107, %108 : vector<4x4x128xf32>
    %110 = arith.maximumf %109, %106 : vector<4x4x128xf32>
    %c0_83 = arith.constant 0 : index
    %c0_84 = arith.constant 0 : index
    %c0_85 = arith.constant 0 : index
    %c0_86 = arith.constant 0 : index
    %111 = vector.load %arg6[%c0_83, %c0_84, %c0_85, %c0_86] : memref<1x4x4x128xf32, #tpu.memory_space<vmem>>, vector<1x4x4x128xf32>
    %112 = vector.shape_cast %111 : vector<1x4x4x128xf32> to vector<4x4x128xf32>
    %113 = vector.shape_cast %110 : vector<4x4x128xf32> to vector<1x4x4x128xf32>
    tpu.vector_store %arg6[%c0_83, %c0_84, %c0_85, %c0_86], %113 {strides = array<i32>} : memref<1x4x4x128xf32, #tpu.memory_space<vmem>>, vector<1x4x4x128xf32>,
    return
  }
  func.func @transform_0(%arg0: i32, %arg1: i32) -> (i32, i32, i32, i32) {
    %c0_i32 = arith.constant 0 : i32
    %c0_i32_0 = arith.constant 0 : i32
    %c0_i32_1 = arith.constant 0 : i32
    %c0_i32_2 = arith.constant 0 : i32
    return %arg0, %c0_i32, %c0_i32_0, %c0_i32_1 : i32, i32, i32, i32
  }
  func.func @transform_1(%arg0: i32, %arg1: i32) -> (i32, i32) {
    %c0_i32 = arith.constant 0 : i32
    %c0_i32_0 = arith.constant 0 : i32
    %c0_i32_1 = arith.constant 0 : i32
    return %c0_i32, %c0_i32_0 : i32, i32
  }
  func.func @transform_2(%arg0: i32, %arg1: i32) -> (i32, i32) {
    %c0_i32 = arith.constant 0 : i32
    %c0_i32_0 = arith.constant 0 : i32
    %c0_i32_1 = arith.constant 0 : i32
    return %c0_i32, %c0_i32_0 : i32, i32
  }
  func.func @transform_3(%arg0: i32, %arg1: i32) -> (i32, i32) {
    %c0_i32 = arith.constant 0 : i32
    %c0_i32_0 = arith.constant 0 : i32
    %c0_i32_1 = arith.constant 0 : i32
    return %c0_i32, %c0_i32_0 : i32, i32
  }
  func.func @transform_4(%arg0: i32, %arg1: i32) -> (i32, i32, i32, i32) {
    %c0_i32 = arith.constant 0 : i32
    %c0_i32_0 = arith.constant 0 : i32
    %c0_i32_1 = arith.constant 0 : i32
    return %arg0, %arg1, %c0_i32, %c0_i32_0 : i32, i32, i32, i32
  }
}

</mosaic_0001>

<bundles_post_ra>
// kernel: tpu_custom_call.1
= control target key start
LH: loop header
LB: loop body
LE: loop exit
PB: predicated region body
PF: predicated region fallthrough
CT: control target
= control target key end

     0   :  { %9 = vsyncpa [#allocation4], 0  ;;  %s3880_s0 = inlined_call_operand.vmem [shape: bf16[2,12,11,16], index: 0, kind: input, shape index: {}]   ;;  %s3881_s1 = inlined_call_operand.vmem [shape: bf16[256,128], index: 1, kind: input, shape index: {}]   ;;  %s3882_s2 = inlined_call_operand.vmem [shape: f32[1,128], index: 2, kind: input, shape index: {}]   ;;  %s3883_s3 = inlined_call_operand.vmem [shape: f32[1,128], index: 3, kind: input, shape index: {}]   ;;  %s3884_s4 = inlined_call_operand.hbm [shape: f32[2,4,4,128], index: 4, kind: output, shape index: {}]  }
   0x1   :  { %11 = vsyncpa [#allocation4 + $0x1], 0  ;;  %s2799_s15 = smov 0   ;;  %s2801_s16 = smov 0  }
   0x2   :  { %s2803_s17 = smov 0   ;;  %s2805_s18 = smov 0  }
   0x3   :  { %s2807_s19 = smov 0   ;;  %s2809_s20 = smov 0  }
   0x4 LB: > { %s2395_s21 = sadd.s32 4294967295, %s2763_s20   ;;  %s2396_s22 = sadd.s32 4294967294, %s2763_s20   ;;  %s2763_s20 = sphi %s2809_s20, %s17_s20   ;;  %s2759_s19 = sphi %s2807_s19, %s3891_s19   ;;  %s2755_s18 = sphi %s2805_s18, %s3890_s18   ;;  %s2751_s17 = sphi %s2803_s17, %s3889_s17   ;;  %s2747_s16 = sphi %s2801_s16, %s3888_s16   ;;  %s2743_s15 = sphi %s2799_s15, %s3887_s15  }
   0x5   : > { %s29_s23 = sadd.s32 1, %s2759_s19  ;;  %s127_s24 = sadd.s32 1, %s2751_s17 }
   0x6   : > { %p31_p0 = scmp.ge.s32.totalorder %s29_s23, 2  ;;  %p137_p1 = scmp.ne.s32.totalorder %s2751_s17, %s2747_s16 }
   0x7   : > { %p138_p2 = scmp.eq.s32.totalorder %s2395_s21, 1  ;;  %p143_p3 = scmp.ne.s32.totalorder %s2747_s16, %s2743_s15 }
   0x8   : > { %s3893_s23 = smov (%p31_p0, %s29_s23), 0  ;;  %p144_p5 = scmp.eq.s32.totalorder %s2396_s22, 1 }
   0x9   : > { %p2839_p4 = por %p138_p2, %p137_p1  ;;  %s122_s26 = ssub.s32 %s2759_s19, %s3893_s23 }
   0xa   : > { %p2399_p6 = scmp.ge.s32.totalorder %s2763_s20, 1  ;;  %p125_p7 = scmp.eq.s32.totalorder %s122_s26, 0 }
   0xb   : > { %p2846_p8 = por %p144_p5, %p143_p3  ;;  %p179_p9 = scmp.lt.s32.totalorder %s2763_s20, 3 }
   0xc   : > { %s2852_s28 = scalar_select %p125_p7, %s2751_s17, %s127_s24  }
   0xd   : > { %p180_p10 = pnand %p2399_p6, %p179_p9 }
   0xe   : > { %p205_p11 = scmp.lt.s32.totalorder (!%p180_p10), %s2755_s18, 1  ;;  %s2765_s8 = smov (!%p180_p10), 16  }
   0xf   : > { %183 = sbr.rel (%p180_p10) target bundleno = 644 (0x284), region = 36  ;;  %s2766_s9 = smov (!%p180_p10), 32  }
  0x10   : > { %s2767_s10 = smov (!%p180_p10), 48   ;;  %s2768_s11 = smov (!%p180_p10), 64  }
  0x11   : > { %s2769_s12 = smov (!%p180_p10), 80   ;;  %s2770_s13 = smov (!%p180_p10), 96  }
  0x12   : > { %s2771_s14 = smov (!%p180_p10), 112   ;;  %s2595_s21 = sshll.u32 (!%p180_p10), %s2755_s18, 4 }
  0x13   : > { %s2304_s26 = scalar_lea.hbm (!%p180_p10), %s3884_s4, %s2595_s21 }
  0x14   : > { %s206_s29 = scalar_select %p205_p11, %s2755_s18, 1  ;;  %vm1613_vm0 = vcmask 130048   ;;  %vm1641_vm1 = vcmask 261120   ;;  %vm1660_vm2 = vcmask 392192   ;;  %vm1679_vm3 = vcmask 523264  }
  0x15   : > { %vm1698_vm4 = vcmask 654336   ;;  %vm1717_vm5 = vcmask 785408   ;;  %vm1736_vm6 = vcmask 916480  }
  0x16   : > { %s2612_s30 = smul.u32 96, %s206_s29 }
  0x18   : > { %s2859_s7 = scalar_lea.vmem %s3880_s0, %s2612_s30  ;;  %s2307_s30 = sshll.u32 %s2304_s26, 4  ;;  %s2308_s30 = int_to_ptr.hbm [resolvable:$true] %s2307_s30 }
  0x19   : > { %v2862_v0 = vld [vmem:[%s2859_s7 + $0x20] sm:$0xf]  ;;  %v2865_v1 = vld [vmem:[%s2859_s7 + $0x24] sm:$0x1]  ;;  %v2868_v2 = vld [vmem:[%s2859_s7 + $0x10] sm:$0xf] }
  0x1a   : > { %v397_v3 = vunpack.c.l.b16 %v2862_v0  ;;  %v398_v4 = vunpack.c.l.b16 %v2865_v1  ;;  %v2873_v5 = vld [vmem:[%s2859_s7 + $0x14] sm:$0x1]  ;;  %v393_v6 = vunpack.c.l.b16 %v2868_v2  ;;  %v2877_v7 = vld [vmem:[%s2859_s7] sm:$0xf]  ;;  %v2880_v8 = vld [vmem:[%s2859_s7 + $0x4] sm:$0x1] }
  0x1b   : > { %v394_v9 = vunpack.c.l.b16 %v2873_v5  ;;  %v389_v10 = vunpack.c.l.b16 %v2877_v7  ;;  %v390_v11 = vunpack.c.l.b16 %v2880_v8  ;;  %v2886_v12 = vld [vmem:[%s2859_s7 + $0x28] sm:$0xf]  ;;  %v2889_v13 = vld [vmem:[%s2859_s7 + $0x2c] sm:$0x1]  ;;  %v2892_v14 = vld [vmem:[%s2859_s7 + $0x18] sm:$0xf] }
  0x1c   : > { %v411_v15 = vpack.c.b16 %v398_v4, %v397_v3  ;;  %v399_v16 = vunpack.c.l.b16 %v2886_v12  ;;  %v400_v17 = vunpack.c.l.b16 %v2889_v13  ;;  %v2899_v18 = vld [vmem:[%s2859_s7 + $0x1c] sm:$0x1]  ;;  %v395_v19 = vunpack.c.l.b16 %v2892_v14  ;;  %v2903_v20 = vld [vmem:[%s2859_s7 + $0x8] sm:$0xf]  ;;  %v2906_v21 = vld [vmem:[%s2859_s7 + $0xc] sm:$0x1] }
  0x1d   : > { %v409_v22 = vpack.c.b16 %v394_v9, %v393_v6  ;;  %v407_v23 = vpack.c.b16 %v390_v11, %v389_v10  ;;  %v396_v24 = vunpack.c.l.b16 %v2899_v18  ;;  %v391_v25 = vunpack.c.l.b16 %v2903_v20  ;;  %v2918_v34 = vld [vmem:[%s2859_s7 + $0x40] sm:$0xf]  ;;  %v2923_v38 = vld [vmem:[%s2859_s7 + $0x44] sm:$0x1]  ;;  %v2926_v39 = vld [vmem:[%s2859_s7 + $0x38] sm:$0xf] }
  0x1e   : > { %v445_v26 = vshrl.u32 %v411_v15, 16  ;;  %v447_v27 = vshll.u32 %v411_v15, 16  ;;  %v412_v28 = vpack.c.b16 %v400_v17, %v399_v16  ;;  %v392_v29 = vunpack.c.l.b16 %v2906_v21  ;;  %v2931_v44 = vld [vmem:[%s2859_s7 + $0x3c] sm:$0x1]  ;;  %v2935_v49 = vld [vmem:[%s2859_s7 + $0x30] sm:$0xf] }
  0x1f   : > { %v431_v30 = vshrl.u32 %v409_v22, 16  ;;  %v433_v31 = vshll.u32 %v409_v22, 16  ;;  %v417_v32 = vshrl.u32 %v407_v23, 16  ;;  %v419_v33 = vshll.u32 %v407_v23, 16  ;;  %v2938_v50 = vld [vmem:[%s2859_s7 + $0x34] sm:$0x1] }
  0x20   : > { %v449_v35 = vrot.slane %v447_v27, 1  ;;  %v454_v36 = vshll.u32 %v412_v28, 16  ;;  %v410_v37 = vpack.c.b16 %v396_v24, %v395_v19  ;;  %v452_v42 = vshrl.u32 %v412_v28, 16  ;;  %v244_v21 = vld [vmem:[%s2859_s7 + $0x14] sm:$0x3]  ;;  %s2699_s6 = sshra.s32 %s2308_s30, 4  ;;  %s2700_s6 = int_to_ptr.hbm [resolvable:$true] %s2699_s6 }
  0x21   : > { %v435_v40 = vrot.slane %v433_v31, 1  ;;  %v421_v41 = vrot.slane %v419_v33, 1  ;;  %v408_v43 = vpack.c.b16 %v392_v29, %v391_v25  ;;  %v405_v48 = vunpack.c.l.b16 %v2918_v34  ;;  %v234_v33 = vld [vmem:[%s2859_s7 + $0x8] sm:$0xe]  ;;  %v242_v13 = vld [vmem:[%s2859_s7 + $0x4] sm:$0x3]  ;;  %p2706_p1 = scmp.lt.s32.totalorder %s2700_s6, %s3884_s4 }
  0x22   : > { %v450_v45 = vor.u32 %v449_v35, %v445_v26  ;;  %v456_v46 = vrot.slane %v454_v36, 1  ;;  %v440_v47 = vshll.u32 %v410_v37, 16  ;;  %v438_v53 = vshrl.u32 %v410_v37, 16  ;;  %v233_v35 = vld [vmem:[%s2859_s7] sm:$0xe]  ;;  %s2701_s18 = scalar_lea.hbm %s2700_s6, 16 }
  0x23   : > { %v436_v51 = vor.u32 %v435_v40, %v431_v30  ;;  %v422_v52 = vor.u32 %v421_v41, %v417_v32  ;;  %v426_v54 = vshll.u32 %v408_v43, 16  ;;  %v424_v56 = vshrl.u32 %v408_v43, 16  ;;  %v235_v32 = vld [vmem:[%s2859_s7 + $0x10] sm:$0xe]  ;;  %p2702_p12 = scmp.ne.s32.totalorder %s2700_s6, %s2701_s18 }
  0x24   : > { %487 = vrot.lane.b32.xlu2 %v450_v45, %s2765_s8  ;;  %v442_v55 = vrot.slane %v440_v47, 1  ;;  %v406_v57 = vunpack.c.l.b16 %v2923_v38  ;;  %v403_v58 = vunpack.c.l.b16 %v2926_v39  ;;  %v404_v60 = vunpack.c.l.b16 %v2931_v44  ;;  %v245_v38 = vld [vmem:[%s2859_s7 + $0x1c] sm:$0x3] }
  0x25   : > { %483 = vrot.lane.b32.xlu1 %v436_v51, %s2765_s8  ;;  %479 = vrot.lane.b32.xlu0 %v422_v52, %s2765_s8  ;;  %v428_v59 = vrot.slane %v426_v54, 1  ;;  %v401_v61 = vunpack.c.l.b16 %v2935_v49  ;;  %v402_v62 = vunpack.c.l.b16 %v2938_v50  ;;  %v457_v10 = vor.u32 %v456_v46, %v452_v42  ;;  %v237_v51 = vld [vmem:[%s2859_s7 + $0x20] sm:$0xe]  ;;  %v236_v52 = vld [vmem:[%s2859_s7 + $0x18] sm:$0xe]  ;;  %p2703_p13 = pnand %p2702_p12, %p2839_p4 }
  0x26   : > { %v415_v63 = vpack.c.b16 %v406_v57, %v405_v48  ;;  %v414_v3 = vpack.c.b16 %v404_v60, %v403_v58  ;;  %v443_v16 = vor.u32 %v442_v55, %v438_v53  ;;  %v508_v37 = vunpack.c.l.b16 %v235_v32  ;;  %v238_v48 = vld [vmem:[%s2859_s7 + $0x28] sm:$0xe] }
  0x27   : > { %v413_v6 = vpack.c.b16 %v402_v62, %v401_v61  ;;  %v429_v19 = vor.u32 %v428_v59, %v424_v56  ;;  %v507_v42 = vunpack.c.l.b16 %v234_v33  ;;  %v506_v43 = vunpack.c.l.b16 %v233_v35  ;;  %v2986_v59 = vld [vmem:[%s2859_s7 + $0x38] sm:$0xe]  ;;  %v2989_v61 = vld [vmem:[%s2859_s7 + $0x30] sm:$0xe]  ;;  %p2704_p0 = pneg %p2703_p13 }
  0x28   : > { %v475_v15 = vshll.u32 %v415_v63, 16  ;;  %v468_v22 = vshll.u32 %v414_v3, 16  ;;  %v473_v25 = vshrl.u32 %v415_v63, 16  ;;  %v466_v27 = vshrl.u32 %v414_v3, 16  ;;  %v243_v63 = vld [vmem:[%s2859_s7 + $0xc] sm:$0x3] }
  0x29   : > { %v461_v23 = vshll.u32 %v413_v6, 16  ;;  %v459_v30 = vshrl.u32 %v413_v6, 16  ;;  %v517_v45 = vpack.c.b16 %v394_v9, %v508_v37  ;;  %v516_v46 = vpack.c.b16 %v392_v29, %v507_v42 }
  0x2a   : > { %v477_v26 = vrot.slane %v475_v15, 1  ;;  %v470_v28 = vrot.slane %v468_v22, 1  ;;  %v515_v47 = vpack.c.b16 %v390_v11, %v506_v43  ;;  %v511_v5 = vunpack.c.l.b16 %v238_v48  ;;  %v2976_v11 = vld [vmem:[%s2859_s7 + $0x40] sm:$0xe] }
  0x2b   : > { %v463_v31 = vrot.slane %v461_v23, 1  ;;  %v526_v53 = vrot.slane %v517_v45, 1  ;;  %v525_v9 = vrot.slane %v516_v46, 1  ;;  %v510_v55 = vunpack.c.l.b16 %v237_v51 }
  0x2c   : > { %489 = vrot.lane.b32.xlu2 %v457_v10, %s2765_s8  ;;  %v478_v36 = vor.u32 %v477_v26, %v473_v25  ;;  %v471_v40 = vor.u32 %v470_v28, %v466_v27  ;;  %v524_v54 = vrot.slane %v515_v47, 1  ;;  %v509_v56 = vunpack.c.l.b16 %v236_v52  ;;  %v247_v25 = vld [vmem:[%s2859_s7 + $0x2c] sm:$0x3]  ;;  %v246_v26 = vld [vmem:[%s2859_s7 + $0x24] sm:$0x3] }
  0x2d   : > { %485 = vrot.lane.b32.xlu1 %v443_v16, %s2765_s8  ;;  %481 = vrot.lane.b32.xlu0 %v429_v19, %s2765_s8  ;;  %v464_v41 = vor.u32 %v463_v31, %v459_v30  ;;  %v520_v8 = vpack.c.b16 %v400_v17, %v511_v5  ;;  %v519_v29 = vpack.c.b16 %v398_v4, %v510_v55  ;;  %v562_v17 = vunpack.c.l.b16 %v244_v21  ;;  %v250_v52 = vld [vmem:[%s2859_s7 + $0x44] sm:$0x3] }
  0x2e   : > { %v518_v58 = vpack.c.b16 %v396_v24, %v509_v56  ;;  %v514_v6 = vunpack.c.l.b16 %v2976_v11  ;;  %v513_v10 = vunpack.c.l.b16 %v2986_v59  ;;  %v512_v1 = vunpack.c.l.b16 %v2989_v61 }
  0x2f   : > { %v529_v3 = vrot.slane %v520_v8, 1  ;;  %v528_v4 = vrot.slane %v519_v29, 1  ;;  %v561_v24 = vunpack.c.l.b16 %v243_v63  ;;  %v560_v15 = vunpack.c.l.b16 %v242_v13 }
  0x30   : > { %v527_v18 = vrot.slane %v518_v58, 1  ;;  %v571_v16 = vpack.c.b16 %v562_v17, %v508_v37  ;;  %v523_v19 = vpack.c.b16 %v406_v57, %v514_v6  ;;  %v522_v22 = vpack.c.b16 %v404_v60, %v513_v10 }
  0x31   : > { %v521_v23 = vpack.c.b16 %v402_v62, %v512_v1  ;;  %v570_v27 = vpack.c.b16 %v561_v24, %v507_v42  ;;  %v569_v28 = vpack.c.b16 %v560_v15, %v506_v43  ;;  %v565_v31 = vunpack.c.l.b16 %v247_v25 }
  0x32   : > { %v595_v57 = vshrl.u32 %v571_v16, 16  ;;  %v598_v30 = vshll.u32 %v571_v16, 16  ;;  %v564_v32 = vunpack.c.l.b16 %v246_v26  ;;  %v532_v44 = vrot.slane %v523_v19, 1 }
  0x33   : > { %v531_v60 = vrot.slane %v522_v22, 1  ;;  %v530_v33 = vrot.slane %v521_v23, 1  ;;  %v563_v35 = vunpack.c.l.b16 %v245_v38  ;;  %v590_v50 = vshll.u32 %v570_v27, 16 }
  0x34   : > { %495 = vrot.lane.b32.xlu2 %v478_v36, %s2765_s8  ;;  %v587_v36 = vshrl.u32 %v570_v27, 16  ;;  %v579_v62 = vshrl.u32 %v569_v28, 16  ;;  %v582_v37 = vshll.u32 %v569_v28, 16  ;;  %v574_v42 = vpack.c.b16 %v565_v31, %v511_v5 }
  0x35   : > { %493 = vrot.lane.b32.xlu1 %v471_v40, %s2765_s8  ;;  %491 = vrot.lane.b32.xlu0 %v464_v41, %s2765_s8  ;;  %v597_v40 = vrot.slane %v595_v57, 1  ;;  %v600_v41 = vrot.slane %v598_v30, 2  ;;  %v573_v43 = vpack.c.b16 %v564_v32, %v510_v55  ;;  %v572_v45 = vpack.c.b16 %v563_v35, %v509_v56 }
  0x36   : > { %v589_v46 = vrot.slane %v587_v36, 1  ;;  %v592_v47 = vrot.slane %v590_v50, 2  ;;  %v581_v48 = vrot.slane %v579_v62, 1  ;;  %v584_v51 = vrot.slane %v582_v37, 2  ;;  %v2404_v36 = vld [vmem:[%s2859_s7 + $0x18] sm:$0xf] }
  0x37   : > { %v619_v8 = vshrl.u32 %v574_v42, 16  ;;  %v622_v21 = vshll.u32 %v574_v42, 16  ;;  %v611_v29 = vshrl.u32 %v573_v43, 16  ;;  %v614_v5 = vshll.u32 %v573_v43, 16  ;;  %v2403_v50 = vld [vmem:[%s2859_s7 + $0x10] sm:$0xf] }
  0x38   : > { %v603_v55 = vshrl.u32 %v572_v45, 16  ;;  %v606_v58 = vshll.u32 %v572_v45, 16  ;;  %v568_v63 = vunpack.c.l.b16 %v250_v52  ;;  %v593_v56 = vor.u32 %v592_v47, %v589_v46  ;;  %v2402_v62 = vld [vmem:[%s2859_s7 + $0x8] sm:$0xf]  ;;  %v2407_v46 = vld [vmem:[%s2859_s7 + $0x30] sm:$0xf] }
  0x39   : > { %v585_v13 = vor.u32 %v584_v51, %v581_v48  ;;  %v613_v24 = vrot.slane %v611_v29, 1  ;;  %v616_v15 = vrot.slane %v614_v5, 2  ;;  %v679_v37 = vunpack.c.l.b16 %v2404_v36  ;;  %v2406_v47 = vld [vmem:[%s2859_s7 + $0x28] sm:$0xf]  ;;  %v2405_v48 = vld [vmem:[%s2859_s7 + $0x20] sm:$0xf] }
  0x3a   : > { %v605_v16 = vrot.slane %v603_v55, 1  ;;  %v608_v19 = vrot.slane %v606_v58, 2  ;;  %v577_v22 = vpack.c.b16 %v568_v63, %v514_v6  ;;  %v682_v51 = vunpack.c.l.b16 %v2407_v46  ;;  %v2410_v58 = vld [vmem:[%s2859_s7 + $0x48] sm:$0xf] }
  0x3b   : > { %v617_v27 = vor.u32 %v616_v15, %v613_v24  ;;  %v688_v42 = vpack.c.b16 %v679_v37, %v679_v37  ;;  %v681_v52 = vunpack.c.l.b16 %v2406_v47  ;;  %v3066_v24 = vld [vmem:[%s2859_s7 + $0x2c] sm:$0x1] }
  0x3c   : > { %537 = vrot.lane.b32.xlu2 %v526_v53, %s2766_s9  ;;  %v249_v53 = vld [vmem:[%s2859_s7 + $0x3c] sm:$0x3]  ;;  %v609_v28 = vor.u32 %v608_v19, %v605_v16  ;;  %v643_v38 = vshrl.u32 %v577_v22, 16  ;;  %v646_v57 = vshll.u32 %v577_v22, 16 }
  0x3d   : > { %535 = vrot.lane.b32.xlu1 %v525_v9, %s2766_s9  ;;  %533 = vrot.lane.b32.xlu0 %v524_v54, %s2766_s9  ;;  %v248_v9 = vld [vmem:[%s2859_s7 + $0x34] sm:$0x3]  ;;  %v601_v54 = vor.u32 %v600_v41, %v597_v40  ;;  %v567_v17 = vunpack.c.l.b16 %v249_v53  ;;  %v678_v40 = vunpack.c.l.b16 %v2403_v50  ;;  %v677_v41 = vunpack.c.l.b16 %v2402_v62  ;;  %v3095_v50 = vld [vmem:[%s2859_s7 + $0x44] sm:$0x1] }
  0x3e   : > { %v645_v32 = vrot.slane %v643_v38, 1  ;;  %v648_v59 = vrot.slane %v646_v57, 2  ;;  %v680_v53 = vunpack.c.l.b16 %v2405_v48  ;;  %v690_v5 = vpack.c.b16 %v681_v52, %v681_v52  ;;  %v3098_v62 = vld [vmem:[%s2859_s7 + $0x3c] sm:$0x1] }
  0x3f   : > { %v576_v23 = vpack.c.b16 %v567_v17, %v513_v10  ;;  %v687_v43 = vpack.c.b16 %v678_v40, %v678_v40  ;;  %v686_v45 = vpack.c.b16 %v677_v41, %v677_v41  ;;  %v2408_v17 = vld [vmem:[%s2859_s7 + $0x38] sm:$0xf]  ;;  %v729_v47 = vunpack.c.l.b16 %v3095_v50  ;;  %v2588_v50 = vld [vmem:[%s3881_s1 + $0x48] sm:$0xff] }
  0x40   : > { %v689_v55 = vpack.c.b16 %v680_v53, %v680_v53  ;;  %v683_v16 = vunpack.c.l.b16 %v2408_v17  ;;  %v728_v48 = vunpack.c.l.b16 %v3098_v62 }
  0x41   : > { %v635_v30 = vshrl.u32 %v576_v23, 16  ;;  %v638_v31 = vshll.u32 %v576_v23, 16  ;;  %v3075_v23 = vld [vmem:[%s2859_s7 + $0x24] sm:$0x1] }
  0x42   : > { %v725_v38 = vunpack.c.l.b16 %v3075_v23  ;;  %v737_v17 = vpack.c.b16 %v728_v48, %v683_v16 }
  0x43   : > { %v637_v61 = vrot.slane %v635_v30, 1  ;;  %v640_v10 = vrot.slane %v638_v31, 2  ;;  %v692_v30 = vpack.c.b16 %v683_v16, %v683_v16 }
  0x44   : > { %543 = vrot.lane.b32.xlu2 %v529_v3, %s2766_s9  ;;  %v566_v3 = vunpack.c.l.b16 %v248_v9  ;;  %v3045_v9 = vld [vmem:[%s2859_s7 + $0x1c] sm:$0x1] }
  0x45   : > { %541 = vrot.lane.b32.xlu1 %v528_v4, %s2766_s9  ;;  %539 = vrot.lane.b32.xlu0 %v527_v18, %s2766_s9  ;;  %v621_v4 = vrot.slane %v619_v8, 1  ;;  %v624_v18 = vrot.slane %v622_v21, 2  ;;  %v3051_v8 = vld [vmem:[%s2859_s7 + $0xc] sm:$0x1]  ;;  %v691_v21 = vpack.c.b16 %v682_v51, %v682_v51  ;;  %v724_v29 = vunpack.c.l.b16 %v3045_v9 }
  0x46   : > { %v575_v25 = vpack.c.b16 %v566_v3, %v512_v1  ;;  %v685_v3 = vunpack.c.l.b16 %v2410_v58 }
  0x47   : > { %v625_v26 = vor.u32 %v624_v18, %v621_v4  ;;  %v733_v4 = vpack.c.b16 %v724_v29, %v679_v37  ;;  %v3063_v18 = vld [vmem:[%s2859_s7 + $0x34] sm:$0x1] }
  0x48   : > { %v627_v11 = vshrl.u32 %v575_v25, 16  ;;  %v630_v6 = vshll.u32 %v575_v25, 16  ;;  %v727_v25 = vunpack.c.l.b16 %v3063_v18 }
  0x4a   : > { %v629_v1 = vrot.slane %v627_v11, 1 }
  0x4c   : > { %549 = vrot.lane.b32.xlu2 %v532_v44, %s2766_s9  ;;  %v632_v44 = vrot.slane %v630_v6, 2  ;;  %v736_v6 = vpack.c.b16 %v727_v25, %v682_v51 }
  0x4d   : > { %547 = vrot.lane.b32.xlu1 %v531_v60, %s2766_s9  ;;  %545 = vrot.lane.b32.xlu0 %v530_v33, %s2766_s9  ;;  %v649_v60 = vor.u32 %v648_v59, %v645_v32  ;;  %v641_v33 = vor.u32 %v640_v10, %v637_v61  ;;  %v755_v59 = vshrl.u32 %v733_v4, 16  ;;  %v734_v10 = vpack.c.b16 %v725_v38, %v680_v53 }
  0x4e   : > { %v633_v35 = vor.u32 %v632_v44, %v629_v1  ;;  %v778_v37 = vshll.u32 %v736_v6, 16  ;;  %v776_v51 = vshrl.u32 %v736_v6, 16 }
  0x54   : > { %654 = vrot.lane.b32.xlu2 %v601_v54, %s2767_s10  ;;  %v3048_v54 = vld [vmem:[%s2859_s7 + $0x14] sm:$0x1] }
  0x55   : > { %652 = vrot.lane.b32.xlu1 %v593_v56, %s2767_s10  ;;  %650 = vrot.lane.b32.xlu0 %v585_v13, %s2767_s10  ;;  %v723_v63 = vunpack.c.l.b16 %v3048_v54  ;;  %v722_v56 = vunpack.c.l.b16 %v3051_v8  ;;  %v2409_v13 = vld [vmem:[%s2859_s7 + $0x40] sm:$0xf] }
  0x56   : > { %v684_v15 = vunpack.c.l.b16 %v2409_v13 }
  0x57   : > { %v732_v19 = vpack.c.b16 %v723_v63, %v678_v40  ;;  %v731_v22 = vpack.c.b16 %v722_v56, %v677_v41 }
  0x58   : > { %v693_v57 = vpack.c.b16 %v684_v15, %v684_v15  ;;  %v738_v13 = vpack.c.b16 %v729_v47, %v684_v15 }
  0x59   : > { %v750_v31 = vshll.u32 %v732_v19, 16  ;;  %v743_v11 = vshll.u32 %v731_v22, 16  ;;  %v748_v1 = vshrl.u32 %v732_v19, 16  ;;  %v3114_v19 = vld [vmem:[%s2859_s7 + $0x1c] sm:$0x1] }
  0x5a   : > { %v1013_v15 = vunpack.c.l.b16 %v3114_v19  ;;  %v792_v6 = vshll.u32 %v738_v13, 16 }
  0x5b   : > { %v752_v44 = vrot.slane %v750_v31, 1 }
  0x5c   : > { %660 = vrot.lane.b32.xlu2 %v625_v26, %s2767_s10  ;;  %v726_v26 = vunpack.c.l.b16 %v3066_v24 }
  0x5d   : > { %658 = vrot.lane.b32.xlu1 %v617_v27, %s2767_s10  ;;  %656 = vrot.lane.b32.xlu0 %v609_v28, %s2767_s10  ;;  %v694_v27 = vpack.c.b16 %v685_v3, %v685_v3  ;;  %v757_v28 = vshll.u32 %v733_v4, 16  ;;  %v2439_v4 = vld [vmem:[%s2859_s7 + $0x18] sm:$0xf] }
  0x5e   : > { %v735_v32 = vpack.c.b16 %v726_v26, %v681_v52  ;;  %v780_v52 = vrot.slane %v778_v37, 1  ;;  %v794_v37 = vrot.slane %v792_v6, 1 }
  0x5f   : > { %v759_v61 = vrot.slane %v757_v28, 1  ;;  %v3120_v28 = vld [vmem:[%s2859_s7 + $0x14] sm:$0x1] }
  0x60   : > { %v771_v40 = vshll.u32 %v735_v32, 16  ;;  %v769_v53 = vshrl.u32 %v735_v32, 16  ;;  %v785_v32 = vshll.u32 %v737_v17, 16 }
  0x61   : > { %v760_v41 = vor.u32 %v759_v61, %v755_v59  ;;  %v1011_v59 = vunpack.c.l.b16 %v3120_v28 }
  0x64   : > { %666 = vrot.lane.b32.xlu2 %v649_v60, %s2767_s10  ;;  %v741_v60 = vshrl.u32 %v731_v22, 16 }
  0x65   : > { %664 = vrot.lane.b32.xlu1 %v641_v33, %s2767_s10  ;;  %662 = vrot.lane.b32.xlu0 %v633_v35, %s2767_s10  ;;  %v745_v33 = vrot.slane %v743_v11, 1  ;;  %v3090_v35 = vld [vmem:[%s2859_s7 + $0x4c] sm:$0x1]  ;;  %v1012_v11 = vunpack.c.l.b16 %v2439_v4 }
  0x67   : > { %v746_v46 = vor.u32 %v745_v33, %v741_v60  ;;  %v2456_v60 = vld [vmem:[%s2859_s7 + $0x10] sm:$0xe]  ;;  %v2465_v33 = vld [vmem:[%s2859_s7 + $0x14] sm:$0x3] }
  0x6c   : > { %699 = vrot.lane.b32.xlu2 %v688_v42, %s2768_s11  ;;  %v764_v42 = vshll.u32 %v734_v10, 16 }
  0x6d   : > { %697 = vrot.lane.b32.xlu1 %v687_v43, %s2768_s11  ;;  %695 = vrot.lane.b32.xlu0 %v686_v45, %s2768_s11  ;;  %v730_v43 = vunpack.c.l.b16 %v3090_v35  ;;  %v753_v45 = vor.u32 %v752_v44, %v748_v1  ;;  %v790_v1 = vshrl.u32 %v738_v13, 16  ;;  %v1029_v44 = vpack.c.b16 %v1013_v15, %v1012_v11 }
  0x6f   : > { %v739_v58 = vpack.c.b16 %v730_v43, %v685_v3  ;;  %v781_v3 = vor.u32 %v780_v52, %v776_v51  ;;  %v1127_v51 = vunpack.c.l.b16 %v2456_v60  ;;  %v1181_v52 = vunpack.c.l.b16 %v2465_v33 }
  0x71   : > { %v799_v31 = vshll.u32 %v739_v58, 16  ;;  %v797_v61 = vshrl.u32 %v739_v58, 16  ;;  %v1190_v4 = vpack.c.b16 %v1181_v52, %v1127_v51 }
  0x74   : > { %705 = vrot.lane.b32.xlu2 %v691_v21, %s2768_s11  ;;  %v773_v21 = vrot.slane %v771_v40, 1  ;;  %v783_v40 = vshrl.u32 %v737_v17, 16  ;;  %v1045_v17 = vshrl.u32 %v1029_v44, 16 }
  0x75   : > { %703 = vrot.lane.b32.xlu1 %v690_v5, %s2768_s11  ;;  %701 = vrot.lane.b32.xlu0 %v689_v55, %s2768_s11  ;;  %v762_v5 = vshrl.u32 %v734_v10, 16  ;;  %v766_v55 = vrot.slane %v764_v42, 1  ;;  %v801_v10 = vrot.slane %v799_v31, 1  ;;  %v2466_v31 = vld [vmem:[%s2859_s7 + $0x1c] sm:$0x3] }
  0x76   : > { %v1182_v8 = vunpack.c.l.b16 %v2466_v31 }
  0x7c   : > { %711 = vrot.lane.b32.xlu2 %v694_v27, %s2768_s11  ;;  %v2438_v27 = vld [vmem:[%s2859_s7 + $0x10] sm:$0xf] }
  0x7d   : > { %709 = vrot.lane.b32.xlu1 %v693_v57, %s2768_s11  ;;  %707 = vrot.lane.b32.xlu0 %v692_v30, %s2768_s11  ;;  %v774_v57 = vor.u32 %v773_v21, %v769_v53  ;;  %v767_v30 = vor.u32 %v766_v55, %v762_v5  ;;  %v1010_v16 = vunpack.c.l.b16 %v2438_v27  ;;  %v802_v53 = vor.u32 %v801_v10, %v797_v61 }
  0x7e   : > { %v3092_v36 = vpop.permute.xlu2 %487  ;;  %v1047_v21 = vshll.u32 %v1029_v44, 16  ;;  %v795_v5 = vor.u32 %v794_v37, %v790_v1  ;;  %v1203_v10 = vshll.u32 %v1190_v4, 16 }
  0x7f   : > { %v1028_v42 = vpack.c.b16 %v1011_v59, %v1010_v16 }
  0x80   : > { %v1049_v19 = vrot.slane %v1047_v21, 1  ;;  %v3159_v21 = vld [vmem:[%s2859_s7 + $0x24] sm:$0x1] }
  0x81   : > { %v1040_v58 = vshll.u32 %v1028_v42, 16  ;;  %v1038_v27 = vshrl.u32 %v1028_v42, 16 }
  0x82   : > { %v1050_v61 = vor.u32 %v1049_v19, %v1045_v17 }
  0x83   : > { %v1042_v28 = vrot.slane %v1040_v58, 1  ;;  %v2474_v58 = vld [vmem:[%s2859_s7 + $0x18] sm:$0xf] }
  0x84   : > { %807 = vrot.lane.b32.xlu2 %v760_v41, %s2769_s12  ;;  %v787_v41 = vrot.slane %v785_v32, 1  ;;  %v1200_v32 = vshrl.u32 %v1190_v4, 16 }
  0x85   : > { %805 = vrot.lane.b32.xlu1 %v753_v45, %s2769_s12  ;;  %803 = vrot.lane.b32.xlu0 %v746_v46, %s2769_s12  ;;  %v3132_v46 = vld [vmem:[%s2859_s7 + $0x8] sm:$0xe]  ;;  %v1043_v44 = vor.u32 %v1042_v28, %v1038_v27  ;;  %v1344_v27 = vunpack.c.l.b16 %v3159_v21 }
  0x86   : > { %v3116_v22 = vpop.permute.xlu2 %489  ;;  %v788_v55 = vor.u32 %v787_v41, %v783_v40  ;;  %v830_v13 = vunpack.c.l.b16 %v3132_v46  ;;  %v1202_v33 = vrot.slane %v1200_v32, 1  ;;  %v1205_v40 = vrot.slane %v1203_v10, 2  ;;  %v2503_v46 = vld [vmem:[%s2859_s7 + $0x2c] sm:$0x3] }
  0x87   : > { %v1631_v37 = vsel %vm1613_vm0, %v2886_v12, %v3116_v22  ;;  %v1136_v41 = vpack.c.b16 %v1011_v59, %v1127_v51 }
  0x88   : > { %v1206_v59 = vor.u32 %v1205_v40, %v1202_v33 }
  0x8c   : > { %813 = vrot.lane.b32.xlu2 %v781_v3, %s2769_s12  ;;  %v839_v3 = vpack.c.b16 %v722_v56, %v830_v13 }
  0x8d   : > { %811 = vrot.lane.b32.xlu1 %v774_v57, %s2769_s12  ;;  %809 = vrot.lane.b32.xlu0 %v767_v30, %s2769_s12  ;;  %v2457_v57 = vld [vmem:[%s2859_s7 + $0x18] sm:$0xe] }
  0x8e   : > { %v3129_v45 = vpop.permute.xlu2 %495  ;;  %v1128_v1 = vunpack.c.l.b16 %v2457_v57  ;;  %v848_v60 = vrot.slane %v839_v3, 1  ;;  %v1298_v3 = vunpack.c.l.b16 %v2474_v58  ;;  %v2493_v57 = vld [vmem:[%s2859_s7 + $0x20] sm:$0xe] }
  0x8f   : > { %v1640_v31 = vsel %vm1613_vm0, %v2918_v34, %v3129_v45 }
  0x90   : > { %v1191_v42 = vpack.c.b16 %v1182_v8, %v1128_v1 }
  0x92   : > { %v1208_v4 = vshrl.u32 %v1191_v42, 16  ;;  %v1211_v17 = vshll.u32 %v1191_v42, 16 }
  0x94   : > { %819 = vrot.lane.b32.xlu2 %v802_v53, %s2769_s12  ;;  %v2483_v53 = vld [vmem:[%s2859_s7 + $0x1c] sm:$0x1]  ;;  %v1210_v32 = vrot.slane %v1208_v4, 1 }
  0x95   : > { %817 = vrot.lane.b32.xlu1 %v795_v5, %s2769_s12  ;;  %815 = vrot.lane.b32.xlu0 %v788_v55, %s2769_s12  ;;  %v1145_v5 = vrot.slane %v1136_v41, 1  ;;  %v2475_v55 = vld [vmem:[%s2859_s7 + $0x20] sm:$0xf]  ;;  %v1343_v19 = vunpack.c.l.b16 %v2483_v53  ;;  %v1307_v41 = vpack.c.b16 %v1298_v3, %v1298_v3 }
  0x96   : > { %v538_v30 = vpop.permute.xlu2 %537  ;;  %v1299_v28 = vunpack.c.l.b16 %v2475_v55 }
  0x97   : > { %v484_v11 = vpop.permute.xlu1 %483  ;;  %v3144_v6 = vpop.permute.xlu0 %479  ;;  %v1352_v10 = vpack.c.b16 %v1343_v19, %v1298_v3 }
  0x98   : > { %v1622_v16 = vsel %vm1613_vm0, %v2868_v2, %v484_v11  ;;  %v1137_v2 = vpack.c.b16 %v1013_v15, %v1128_v1  ;;  %v2492_v11 = vld [vmem:[%s2859_s7 + $0x18] sm:$0xe]  ;;  %v2501_v1 = vld [vmem:[%s2859_s7 + $0x1c] sm:$0x3]  ;;  %v1308_v40 = vpack.c.b16 %v1299_v28, %v1299_v28 }
  0x99   : > { %v3149_v56 = vsel %vm1641_vm1, %v1622_v16, %v538_v30  ;;  %v2502_v30 = vld [vmem:[%s2859_s7 + $0x24] sm:$0x3]  ;;  %v1213_v16 = vrot.slane %v1211_v17, 2  ;;  %v1364_v53 = vshll.u32 %v1352_v10, 16  ;;  %v1362_v58 = vshrl.u32 %v1352_v10, 16 }
  0x9a   : > { %v1146_v51 = vrot.slane %v1137_v2, 1  ;;  %v1506_v8 = vunpack.c.l.b16 %v2502_v30  ;;  %v1505_v2 = vunpack.c.l.b16 %v2501_v1 }
  0x9b   : > { %v1214_v42 = vor.u32 %v1213_v16, %v1210_v32 }
  0x9c   : > { %1102 = vrot.lane.b32.xlu2 %v1050_v61, %s2765_s8  ;;  %v1353_v61 = vpack.c.b16 %v1344_v27, %v1299_v28  ;;  %v1366_v28 = vrot.slane %v1364_v53, 1 }
  0x9d   : > { %1100 = vrot.lane.b32.xlu1 %v1043_v44, %s2765_s8  ;;  %857 = vrot.lane.b32.xlu0 %v848_v60, %s2770_s13  ;;  %v1452_v60 = vunpack.c.l.b16 %v2493_v57 }
  0x9e   : > { %v544_v52 = vpop.permute.xlu2 %543  ;;  %v1369_v55 = vshrl.u32 %v1353_v61, 16 }
  0x9f   : > { %v3162_v12 = vsel %vm1641_vm1, %v1631_v37, %v544_v52  ;;  %v3164_v22 = vpop.permute.xlu1 %485  ;;  %v482_v15 = vpop.permute.xlu0 %481  ;;  %v1451_v37 = vunpack.c.l.b16 %v2492_v11  ;;  %v1371_v52 = vshll.u32 %v1353_v61, 16  ;;  %v1515_v21 = vpack.c.b16 %v1506_v8, %v1452_v60 }
  0xa0   : > { %v1619_v32 = vsel %vm1613_vm0, %v2903_v20, %v482_v15  ;;  %v1367_v20 = vor.u32 %v1366_v28, %v1362_v58  ;;  %v3222_v58 = vld [vmem:[%s2859_s7 + $0x24] sm:$0x1] }
  0xa1   : > { %v1514_v4 = vpack.c.b16 %v1505_v2, %v1451_v37  ;;  %v1373_v17 = vrot.slane %v1371_v52, 1  ;;  %v1535_v11 = vshll.u32 %v1515_v21, 16  ;;  %v1461_v2 = vpack.c.b16 %v1344_v27, %v1452_v60  ;;  %v2425_v52 = vld [vmem:[%s2859_s7 + $0x30] sm:$0xe] }
  0xa4   : > { %1271 = vrot.lane.b32.xlu2 %v1206_v59, %s2767_s10  ;;  %v3187_v59 = vld [vmem:[%s2859_s7 + $0x28] sm:$0xe] }
  0xa5   : > { %1156 = vrot.lane.b32.xlu1 %v1146_v51, %s2766_s9  ;;  %1154 = vrot.lane.b32.xlu0 %v1145_v5, %s2766_s9  ;;  %v2433_v51 = vld [vmem:[%s2859_s7 + $0x2c] sm:$0x3]  ;;  %v1460_v5 = vpack.c.b16 %v1343_v19, %v1451_v37  ;;  %v834_v3 = vunpack.c.l.b16 %v3187_v59  ;;  %v1616_v19 = vsel %vm1613_vm0, %v2877_v7, %v3144_v6  ;;  %v1524_v37 = vshrl.u32 %v1514_v4, 16  ;;  %v2441_v59 = vld [vmem:[%s2859_s7 + $0x28] sm:$0xf] }
  0xa6   : > { %v550_v44 = vpop.permute.xlu2 %549  ;;  %v888_v57 = vunpack.c.l.b16 %v2433_v51  ;;  %v1527_v7 = vshll.u32 %v1514_v4, 16  ;;  %v1374_v6 = vor.u32 %v1373_v17, %v1369_v55  ;;  %v3215_v51 = vld [vmem:[%s2859_s7 + $0x2c] sm:$0x1]  ;;  %v2440_v55 = vld [vmem:[%s2859_s7 + $0x20] sm:$0xf]  ;;  %v1625_v17 = vsel %vm1613_vm0, %v2892_v14, %v3164_v22 }
  0xa7   : > { %v3180_v33 = vsel %vm1641_vm1, %v1640_v31, %v550_v44  ;;  %v3182_v34 = vpop.permute.xlu1 %493  ;;  %v3184_v45 = vpop.permute.xlu0 %491  ;;  %v1532_v31 = vshrl.u32 %v1515_v21, 16  ;;  %v1469_v1 = vrot.slane %v1460_v5, 1  ;;  %v1628_v5 = vsel %vm1613_vm0, %v2862_v0, %v3092_v36  ;;  %v2434_v4 = vld [vmem:[%s2859_s7 + $0x34] sm:$0x3] }
  0xa8   : > { %v897_v15 = vpack.c.b16 %v888_v57, %v834_v3  ;;  %v1014_v22 = vunpack.c.l.b16 %v2440_v55 }
  0xaa   : > { %v935_v53 = vshrl.u32 %v897_v15, 16  ;;  %v938_v21 = vshll.u32 %v897_v15, 16  ;;  %v843_v15 = vpack.c.b16 %v726_v26, %v834_v3 }
  0xac   : > { %1318 = vrot.lane.b32.xlu2 %v1308_v40, %s2768_s11  ;;  %v1534_v40 = vrot.slane %v1532_v31, 1  ;;  %v1470_v31 = vrot.slane %v1461_v2, 1  ;;  %v1637_v2 = vsel %vm1613_vm0, %v2926_v39, %v3182_v34 }
  0xad   : > { %1316 = vrot.lane.b32.xlu1 %v1307_v41, %s2768_s11  ;;  %1273 = vrot.lane.b32.xlu0 %v1214_v42, %s2767_s10  ;;  %v1526_v41 = vrot.slane %v1524_v37, 1  ;;  %v1529_v42 = vrot.slane %v1527_v7, 2 }
  0xae   : > { %v655_v30 = vpop.permute.xlu2 %654 }
  0xaf   : > { %v3201_v16 = vsel %vm1660_vm2, %v3149_v56, %v655_v30  ;;  %v536_v61 = vpop.permute.xlu1 %535  ;;  %v534_v10 = vpop.permute.xlu0 %533  ;;  %v1537_v56 = vrot.slane %v1535_v11, 2  ;;  %v835_v11 = vunpack.c.l.b16 %v2425_v52  ;;  %v1530_v14 = vor.u32 %v1529_v42, %v1526_v41 }
  0xb0   : > { %v3204_v44 = vsel %vm1641_vm1, %v1619_v32, %v536_v61  ;;  %v3207_v8 = vsel %vm1641_vm1, %v1616_v19, %v534_v10  ;;  %v1016_v19 = vunpack.c.l.b16 %v2441_v59  ;;  %v1017_v32 = vunpack.c.l.b16 %v3215_v51 }
  0xb1   : > { %v1538_v60 = vor.u32 %v1537_v56, %v1534_v40  ;;  %v889_v61 = vunpack.c.l.b16 %v2434_v4  ;;  %v937_v10 = vrot.slane %v935_v53, 1  ;;  %v844_v37 = vpack.c.b16 %v727_v25, %v835_v11 }
  0xb2   : > { %v1031_v7 = vpack.c.b16 %v1017_v32, %v1016_v19  ;;  %v1634_v25 = vsel %vm1613_vm0, %v2935_v49, %v3184_v45  ;;  %v852_v59 = vrot.slane %v843_v15, 1 }
  0xb3   : > { %v898_v56 = vpack.c.b16 %v889_v61, %v835_v11  ;;  %v853_v34 = vrot.slane %v844_v37, 1 }
  0xb4   : > { %1478 = vrot.lane.b32.xlu2 %v1469_v1, %s2770_s13  ;;  %v940_v1 = vrot.slane %v938_v21, 2  ;;  %v1061_v21 = vshll.u32 %v1031_v7, 16 }
  0xb5   : > { %1426 = vrot.lane.b32.xlu1 %v1374_v6, %s2769_s12  ;;  %1424 = vrot.lane.b32.xlu0 %v1367_v20, %s2769_s12  ;;  %v2458_v6 = vld [vmem:[%s2859_s7 + $0x20] sm:$0xe]  ;;  %v2467_v20 = vld [vmem:[%s2859_s7 + $0x24] sm:$0x3]  ;;  %v943_v49 = vshrl.u32 %v898_v56, 16  ;;  %v946_v45 = vshll.u32 %v898_v56, 16 }
  0xb6   : > { %v661_v27 = vpop.permute.xlu2 %660  ;;  %v941_v18 = vor.u32 %v940_v1, %v937_v10  ;;  %v1129_v26 = vunpack.c.l.b16 %v2458_v6  ;;  %v1183_v3 = vunpack.c.l.b16 %v2467_v20 }
  0xb7   : > { %v3230_v28 = vsel %vm1660_vm2, %v3162_v12, %v661_v27  ;;  %v542_v57 = vpop.permute.xlu1 %541  ;;  %v540_v30 = vpop.permute.xlu0 %539  ;;  %v1015_v12 = vunpack.c.l.b16 %v3222_v58  ;;  %v1059_v27 = vshrl.u32 %v1031_v7, 16  ;;  %v2468_v58 = vld [vmem:[%s2859_s7 + $0x2c] sm:$0x3] }
  0xb8   : > { %v3233_v0 = vsel %vm1641_vm1, %v1628_v5, %v542_v57  ;;  %v3236_v36 = vsel %vm1641_vm1, %v1625_v17, %v540_v30  ;;  %v2459_v5 = vld [vmem:[%s2859_s7 + $0x28] sm:$0xe]  ;;  %v945_v17 = vrot.slane %v943_v49, 1  ;;  %v948_v57 = vrot.slane %v946_v45, 2  ;;  %v2477_v45 = vld [vmem:[%s2859_s7 + $0x30] sm:$0xf] }
  0xb9   : > { %v1030_v40 = vpack.c.b16 %v1015_v12, %v1014_v22  ;;  %v1130_v30 = vunpack.c.l.b16 %v2459_v5  ;;  %v1184_v10 = vunpack.c.l.b16 %v2468_v58  ;;  %v1138_v56 = vpack.c.b16 %v1015_v12, %v1129_v26 }
  0xba   : > { %v949_v6 = vor.u32 %v948_v57, %v945_v17 }
  0xbb   : > { %v1054_v51 = vshll.u32 %v1030_v40, 16  ;;  %v1052_v55 = vshrl.u32 %v1030_v40, 16  ;;  %v1139_v20 = vpack.c.b16 %v1017_v32, %v1130_v30  ;;  %v2444_v32 = vld [vmem:[%s2859_s7 + $0x40] sm:$0xf] }
  0xbc   : > { %1597 = vrot.lane.b32.xlu2 %v1538_v60, %s2771_s14  ;;  %v1063_v60 = vrot.slane %v1061_v21, 1  ;;  %v2476_v21 = vld [vmem:[%s2859_s7 + $0x28] sm:$0xf] }
  0xbd   : > { %1595 = vrot.lane.b32.xlu1 %v1530_v14, %s2771_s14  ;;  %1480 = vrot.lane.b32.xlu0 %v1470_v31, %s2770_s13  ;;  %v1056_v4 = vrot.slane %v1054_v51, 1  ;;  %v1300_v58 = vunpack.c.l.b16 %v2476_v21 }
  0xbe   : > { %v667_v41 = vpop.permute.xlu2 %666  ;;  %v1064_v7 = vor.u32 %v1063_v60, %v1059_v27  ;;  %v1022_v60 = vunpack.c.l.b16 %v2444_v32 }
  0xbf   : > { %v3257_v42 = vsel %vm1660_vm2, %v3180_v33, %v667_v41  ;;  %v548_v52 = vpop.permute.xlu1 %547  ;;  %v546_v24 = vpop.permute.xlu0 %545  ;;  %v1192_v33 = vpack.c.b16 %v1183_v3, %v1129_v26  ;;  %v2445_v41 = vld [vmem:[%s2859_s7 + $0x48] sm:$0xf] }
  0xc0   : > { %v3260_v53 = vsel %vm1641_vm1, %v1637_v2, %v548_v52  ;;  %v3263_v39 = vsel %vm1641_vm1, %v1634_v25, %v546_v24  ;;  %v1193_v2 = vpack.c.b16 %v1184_v10, %v1130_v30  ;;  %v3290_v25 = vld [vmem:[%s2859_s7 + $0x4c] sm:$0x1]  ;;  %v3294_v52 = vld [vmem:[%s2859_s7 + $0x44] sm:$0x1] }
  0xc1   : > { %v1216_v22 = vshrl.u32 %v1192_v33, 16  ;;  %v1219_v61 = vshll.u32 %v1192_v33, 16  ;;  %v1025_v27 = vunpack.c.l.b16 %v3290_v25 }
  0xc2   : > { %v1227_v5 = vshll.u32 %v1193_v2, 16 }
  0xc3   : > { %v1218_v15 = vrot.slane %v1216_v22, 1  ;;  %v1221_v40 = vrot.slane %v1219_v61, 2 }
  0xc4   : > { %982 = vrot.lane.b32.xlu2 %v941_v18, %s2771_s14  ;;  %v1229_v17 = vrot.slane %v1227_v5, 2 }
  0xc5   : > { %867 = vrot.lane.b32.xlu1 %v853_v34, %s2770_s13  ;;  %865 = vrot.lane.b32.xlu0 %v852_v59, %s2770_s13  ;;  %v1222_v3 = vor.u32 %v1221_v40, %v1218_v15  ;;  %v1147_v34 = vrot.slane %v1138_v56, 1  ;;  %v1224_v59 = vshrl.u32 %v1193_v2, 16 }
  0xc6   : > { %v700_v31 = vpop.permute.xlu2 %699 }
  0xc7   : > { %v3272_v11 = vsel %vm1679_vm3, %v3201_v16, %v700_v31  ;;  %v653_v19 = vpop.permute.xlu1 %652  ;;  %v651_v14 = vpop.permute.xlu0 %650  ;;  %v1057_v16 = vor.u32 %v1056_v4, %v1052_v55  ;;  %v1023_v55 = vunpack.c.l.b16 %v3294_v52  ;;  %v1301_v4 = vunpack.c.l.b16 %v2477_v45  ;;  %v2421_v52 = vld [vmem:[%s2859_s7 + $0x10] sm:$0xe] }
  0xc8   : > { %v3276_v1 = vsel %vm1660_vm2, %v3204_v44, %v653_v19  ;;  %v3280_v37 = vsel %vm1660_vm2, %v3207_v8, %v651_v14  ;;  %v1148_v44 = vrot.slane %v1139_v20, 1  ;;  %v3286_v8 = vld [vmem:[%s2859_s7 + $0x2c] sm:$0x1]  ;;  %v3321_v19 = vld [vmem:[%s2859_s7 + $0x34] sm:$0x1] }
  0xc9   : > { %v1345_v33 = vunpack.c.l.b16 %v3286_v8  ;;  %v1034_v30 = vpack.c.b16 %v1023_v55, %v1022_v60  ;;  %v1310_v10 = vpack.c.b16 %v1301_v4, %v1301_v4  ;;  %v831_v60 = vunpack.c.l.b16 %v2421_v52 }
  0xcb   : > { %v1082_v56 = vshll.u32 %v1034_v30, 16 }
  0xcc   : > { %1106 = vrot.lane.b32.xlu2 %v1064_v7, %s2765_s8 }
  0xcd   : > { %1104 = vrot.lane.b32.xlu1 %v1057_v16, %s2765_s8  ;;  %984 = vrot.lane.b32.xlu0 %v949_v6, %s2771_s14  ;;  %v1309_v6 = vpack.c.b16 %v1300_v58, %v1300_v58  ;;  %v1084_v32 = vrot.slane %v1082_v56, 1 }
  0xce   : > { %v706_v18 = vpop.permute.xlu2 %705 }
  0xcf   : > { %v3298_v12 = vsel %vm1679_vm3, %v3230_v28, %v706_v18  ;;  %v659_v24 = vpop.permute.xlu1 %658  ;;  %v657_v26 = vpop.permute.xlu0 %656  ;;  %v1024_v28 = vunpack.c.l.b16 %v2445_v41  ;;  %v1080_v18 = vshrl.u32 %v1034_v30, 16 }
  0xd0   : > { %v3303_v51 = vsel %vm1660_vm2, %v3233_v0, %v659_v24  ;;  %v3307_v49 = vsel %vm1660_vm2, %v3236_v36, %v657_v26  ;;  %v1354_v0 = vpack.c.b16 %v1345_v33, %v1300_v58  ;;  %v1226_v36 = vrot.slane %v1224_v59, 1 }
  0xd1   : > { %v1035_v57 = vpack.c.b16 %v1025_v27, %v1024_v28 }
  0xd2   : > { %v1378_v20 = vshll.u32 %v1354_v0, 16  ;;  %v1230_v15 = vor.u32 %v1229_v17, %v1226_v36  ;;  %v1376_v2 = vshrl.u32 %v1354_v0, 16  ;;  %v2471_v0 = vld [vmem:[%s2859_s7 + $0x44] sm:$0x3]  ;;  %v2430_v17 = vld [vmem:[%s2859_s7 + $0x14] sm:$0x3] }
  0xd3   : > { %v1089_v40 = vshll.u32 %v1035_v57, 16  ;;  %v1087_v41 = vshrl.u32 %v1035_v57, 16  ;;  %v2429_v57 = vld [vmem:[%s2859_s7 + $0xc] sm:$0x3] }
  0xd4   : > { %1275 = vrot.lane.b32.xlu2 %v1222_v3, %s2767_s10 }
  0xd5   : > { %1160 = vrot.lane.b32.xlu1 %v1148_v44, %s2766_s9  ;;  %1158 = vrot.lane.b32.xlu0 %v1147_v34, %s2766_s9  ;;  %v1380_v44 = vrot.slane %v1378_v20, 1 }
  0xd6   : > { %v712_v31 = vpop.permute.xlu2 %711 }
  0xd7   : > { %v3325_v14 = vsel %vm1679_vm3, %v3257_v42, %v712_v31  ;;  %v665_v22 = vpop.permute.xlu1 %664  ;;  %v663_v61 = vpop.permute.xlu0 %662  ;;  %v1346_v42 = vunpack.c.l.b16 %v3321_v19  ;;  %v1381_v28 = vor.u32 %v1380_v44, %v1376_v2  ;;  %v2495_v31 = vld [vmem:[%s2859_s7 + $0x30] sm:$0xe]  ;;  %v1187_v19 = vunpack.c.l.b16 %v2471_v0 }
  0xd8   : > { %v3329_v7 = vsel %vm1660_vm2, %v3260_v53, %v665_v22  ;;  %v3333_v16 = vsel %vm1660_vm2, %v3263_v39, %v663_v61  ;;  %v2462_v53 = vld [vmem:[%s2859_s7 + $0x40] sm:$0xe]  ;;  %v1091_v39 = vrot.slane %v1089_v40, 1  ;;  %v2494_v61 = vld [vmem:[%s2859_s7 + $0x28] sm:$0xe]  ;;  %v884_v40 = vunpack.c.l.b16 %v2429_v57 }
  0xd9   : > { %v1355_v24 = vpack.c.b16 %v1346_v42, %v1301_v4  ;;  %v1133_v59 = vunpack.c.l.b16 %v2462_v53  ;;  %v1085_v4 = vor.u32 %v1084_v32, %v1080_v18  ;;  %v1454_v2 = vunpack.c.l.b16 %v2495_v31 }
  0xda   : > { %v1092_v58 = vor.u32 %v1091_v39, %v1087_v41  ;;  %v1453_v41 = vunpack.c.l.b16 %v2494_v61  ;;  %v893_v32 = vpack.c.b16 %v884_v40, %v830_v13  ;;  %v2472_v13 = vld [vmem:[%s2859_s7 + $0x4c] sm:$0x3]  ;;  %v2480_v61 = vld [vmem:[%s2859_s7 + $0x48] sm:$0xf] }
  0xdb   : > { %v1142_v36 = vpack.c.b16 %v1023_v55, %v1133_v59  ;;  %v885_v55 = vunpack.c.l.b16 %v2430_v17  ;;  %v1196_v39 = vpack.c.b16 %v1187_v19, %v1133_v59  ;;  %v1188_v17 = vunpack.c.l.b16 %v2472_v13 }
  0xdc   : > { %1322 = vrot.lane.b32.xlu2 %v1310_v10, %s2768_s11  ;;  %v2463_v10 = vld [vmem:[%s2859_s7 + $0x48] sm:$0xe]  ;;  %v906_v8 = vshll.u32 %v893_v32, 16 }
  0xdd   : > { %1320 = vrot.lane.b32.xlu1 %v1309_v6, %s2768_s11  ;;  %1277 = vrot.lane.b32.xlu0 %v1230_v15, %s2767_s10  ;;  %v1151_v15 = vrot.slane %v1142_v36, 1  ;;  %v1134_v53 = vunpack.c.l.b16 %v2463_v10  ;;  %v894_v18 = vpack.c.b16 %v885_v55, %v831_v60  ;;  %v1507_v36 = vunpack.c.l.b16 %v2503_v46  ;;  %v3401_v10 = vld [vmem:[%s2859_s7 + $0x4c] sm:$0x1] }
  0xde   : > { %v808_v26 = vpop.permute.xlu2 %807  ;;  %v908_v19 = vrot.slane %v906_v8, 2 }
  0xdf   : > { %v3343_v3 = vsel %vm1698_vm4, %v3272_v11, %v808_v26  ;;  %v698_v34 = vpop.permute.xlu1 %697  ;;  %v696_v21 = vpop.permute.xlu0 %695  ;;  %v1385_v11 = vshll.u32 %v1355_v24, 16  ;;  %v1143_v52 = vpack.c.b16 %v1025_v27, %v1134_v53  ;;  %v2504_v26 = vld [vmem:[%s2859_s7 + $0x34] sm:$0x3]  ;;  %v911_v59 = vshrl.u32 %v894_v18, 16 }
  0xe0   : > { %v3347_v45 = vsel %vm1679_vm3, %v3276_v1, %v698_v34  ;;  %v3351_v5 = vsel %vm1679_vm3, %v3280_v37, %v696_v21  ;;  %v840_v1 = vpack.c.b16 %v723_v63, %v831_v60  ;;  %v1383_v37 = vshrl.u32 %v1355_v24, 16 }
  0xe1   : > { %v1387_v30 = vrot.slane %v1385_v11, 1  ;;  %v1248_v24 = vshrl.u32 %v1196_v39, 16  ;;  %v1251_v21 = vshll.u32 %v1196_v39, 16  ;;  %v1508_v11 = vunpack.c.l.b16 %v2504_v26 }
  0xe2   : > { %v849_v56 = vrot.slane %v840_v1, 1  ;;  %v1197_v55 = vpack.c.b16 %v1188_v17, %v1134_v53  ;;  %v3410_v39 = vunpack.c.l.b16 %v2480_v61  ;;  %v2591_v17 = vld [vmem:[%s3881_s1 + $0x60] sm:$0xff]  ;;  %v2586_v61 = vld [vmem:[%s3881_s1 + $0x38] sm:$0xff] }
  0xe3   : > { %v1388_v44 = vor.u32 %v1387_v30, %v1383_v37  ;;  %v1250_v1 = vrot.slane %v1248_v24, 1  ;;  %v1253_v57 = vrot.slane %v1251_v21, 2  ;;  %v913_v37 = vrot.slane %v911_v59, 1  ;;  %2596 = vmatpush.bf16.msra.mxu2 %v2586_v61  ;;  %2074 = vmatpush.bf16.msra.mxu0 %v2586_v61 }
  0xe4   : > { %1428 = vrot.lane.b32.xlu2 %v1381_v28, %s2769_s12  ;;  %v1256_v26 = vshrl.u32 %v1197_v55, 16 }
  0xe5   : > { %1114 = vrot.lane.b32.xlu1 %v1092_v58, %s2765_s8  ;;  %1112 = vrot.lane.b32.xlu0 %v1085_v4, %s2765_s8  ;;  %v914_v58 = vshll.u32 %v894_v18, 16  ;;  %v903_v4 = vshrl.u32 %v893_v32, 16  ;;  %v1349_v18 = vunpack.c.l.b16 %v3401_v10 }
  0xe6   : > { %v3362_v22 = vpop.permute.xlu2 %813  ;;  %v1258_v13 = vrot.slane %v1256_v26, 1  ;;  %v2589_v26 = vld [vmem:[%s3881_s1 + $0x50] sm:$0xff] }
  0xe7   : > { %v704_v6 = vpop.permute.xlu1 %703  ;;  %v702_v20 = vpop.permute.xlu0 %701  ;;  %v916_v30 = vrot.slane %v914_v58, 2  ;;  %v905_v31 = vrot.slane %v903_v4, 1  ;;  %v3436_v4 = vld [vmem:[%s2859_s7 + $0x54] sm:$0x1]  ;;  %v1710_v9 = vsel %vm1698_vm4, %v3298_v12, %v3362_v22 }
  0xe8   : > { %v3368_v54 = vsel %vm1679_vm3, %v3303_v51, %v704_v6  ;;  %v3372_v63 = vsel %vm1679_vm3, %v3307_v49, %v702_v20  ;;  %v1463_v51 = vpack.c.b16 %v1346_v42, %v1454_v2  ;;  %v1462_v49 = vpack.c.b16 %v1345_v33, %v1453_v41  ;;  %v2594_v6 = vld [vmem:[%s3881_s1 + $0x78] sm:$0xff] }
  0xe9   : > { %2107 = vmatpush.bf16.msra.mxu1 %v2594_v6  ;;  %2604 = vmatpush.bf16.msra.mxu3 %v2594_v6  ;;  %v2590_v6 = vld [vmem:[%s3881_s1 + $0x58] sm:$0xff] }
  0xea   : > { %v1472_v27 = vrot.slane %v1463_v51, 1  ;;  %v1471_v0 = vrot.slane %v1462_v49, 1  ;;  %v2593_v49 = vld [vmem:[%s3881_s1 + $0x70] sm:$0xff] }
  0xec   : > { %1166 = vrot.lane.b32.xlu2 %v1151_v15, %s2766_s9  ;;  %v1254_v15 = vor.u32 %v1253_v57, %v1250_v1 }
  0xed   : > { %859 = vrot.lane.b32.xlu1 %v849_v56, %s2770_s13  ;;  %1430 = vrot.lane.b32.xlu0 %v1388_v44, %s2769_s12  ;;  %v917_v44 = vor.u32 %v916_v30, %v913_v37  ;;  %v1350_v37 = vunpack.c.l.b16 %v3436_v4  ;;  %v2451_v4 = vld [vmem:[%s2859_s7 + $0x34] sm:$0x1] }
  0xee   : > { %v820_v34 = vpop.permute.xlu2 %819  ;;  %2108 = vmatpush.bf16.msra.mxu1 %v2593_v49  ;;  %2605 = vmatpush.bf16.msra.mxu3 %v2593_v49 }
  0xef   : > { %v3388_v42 = vsel %vm1698_vm4, %v3325_v14, %v820_v34  ;;  %v710_v28 = vpop.permute.xlu1 %709  ;;  %v708_v60 = vpop.permute.xlu0 %707  ;;  %v1152_v14 = vrot.slane %v1143_v52, 1  ;;  %v1259_v34 = vshll.u32 %v1197_v55, 16 }
  0xf0   : > { %v3392_v25 = vsel %vm1679_vm3, %v3329_v7, %v710_v28  ;;  %v3396_v33 = vsel %vm1679_vm3, %v3333_v16, %v708_v60  ;;  %v1517_v7 = vpack.c.b16 %v1508_v11, %v1454_v2  ;;  %v1516_v16 = vpack.c.b16 %v1507_v36, %v1453_v41  ;;  %v2592_v60 = vld [vmem:[%s3881_s1 + $0x68] sm:$0xff]  ;;  %v2481_v36 = vld [vmem:[%s2859_s7 + $0x50] sm:$0xf] }
  0xf1   : > { %v909_v2 = vor.u32 %v908_v19, %v905_v31  ;;  %v1261_v28 = vrot.slane %v1259_v34, 2  ;;  %v1305_v19 = vunpack.c.l.b16 %v2481_v36 }
  0xf2   : > { %v1548_v32 = vshrl.u32 %v1517_v7, 16  ;;  %v1551_v51 = vshll.u32 %v1517_v7, 16  ;;  %v1540_v52 = vshrl.u32 %v1516_v16, 16  ;;  %v1543_v24 = vshll.u32 %v1516_v16, 16  ;;  %2109 = vmatpush.bf16.msra.mxu1 %v2592_v60  ;;  %2606 = vmatpush.bf16.msra.mxu3 %v2592_v60  ;;  %v2435_v7 = vld [vmem:[%s2859_s7 + $0x3c] sm:$0x3] }
  0xf3   : > { %v1262_v57 = vor.u32 %v1261_v28, %v1258_v13  ;;  %v2426_v16 = vld [vmem:[%s2859_s7 + $0x38] sm:$0xe]  ;;  %v1359_v55 = vpack.c.b16 %v1350_v37, %v1305_v19  ;;  %v1314_v34 = vpack.c.b16 %v1305_v19, %v1305_v19  ;;  %v2507_v13 = vld [vmem:[%s2859_s7 + $0x4c] sm:$0x3] }
  0xf4   : > { %1484 = vrot.lane.b32.xlu2 %v1472_v27, %s2770_s13  ;;  %v1553_v21 = vrot.slane %v1551_v51, 2  ;;  %v1542_v59 = vrot.slane %v1540_v52, 1  ;;  %v1545_v46 = vrot.slane %v1543_v24, 2  ;;  %v836_v52 = vunpack.c.l.b16 %v2426_v16  ;;  %v2585_v24 = vld [vmem:[%s3881_s1 + $0x30] sm:$0xff] }
  0xf5   : > { %1482 = vrot.lane.b32.xlu1 %v1471_v0, %s2770_s13  ;;  %1168 = vrot.lane.b32.xlu0 %v1152_v14, %s2766_s9  ;;  %v1411_v60 = vshrl.u32 %v1359_v55, 16  ;;  %v1511_v19 = vunpack.c.l.b16 %v2507_v13 }
  0xf6   : > { %v3408_v20 = vpop.permute.xlu2 %1102  ;;  %v1546_v1 = vor.u32 %v1545_v46, %v1542_v59  ;;  %2110 = vmatpush.bf16.msra.mxu1 %v2591_v17  ;;  %2607 = vmatpush.bf16.msra.mxu3 %v2591_v17  ;;  %v2508_v46 = vld [vmem:[%s2859_s7 + $0x54] sm:$0x3]  ;;  %v845_v28 = vpack.c.b16 %v728_v48, %v836_v52 }
  0xf7   : > { %v806_v40 = vpop.permute.xlu1 %805  ;;  %v804_v56 = vpop.permute.xlu0 %803  ;;  %2597 = vmatpush.bf16.msra.mxu2 %v2585_v24  ;;  %2075 = vmatpush.bf16.msra.mxu0 %v2585_v24  ;;  %v1512_v62 = vunpack.c.l.b16 %v2508_v46  ;;  %v2582_v24 = vld [vmem:[%s3881_s1 + $0x18] sm:$0xff] }
  0xf8   : > { %v3415_v41 = vsel %vm1698_vm4, %v3347_v45, %v806_v40  ;;  %v3419_v53 = vsel %vm1698_vm4, %v3351_v5, %v804_v56  ;;  %v1358_v45 = vpack.c.b16 %v1349_v18, %v3410_v39  ;;  %v1550_v5 = vrot.slane %v1548_v32, 1 }
  0xf9   : > { %v890_v40 = vunpack.c.l.b16 %v2435_v7  ;;  %v854_v61 = vrot.slane %v845_v28, 1  ;;  %v2581_v28 = vld [vmem:[%s3881_s1 + $0x10] sm:$0xff] }
  0xfa   : > { %v1406_v11 = vshll.u32 %v1358_v45, 16  ;;  %v1554_v14 = vor.u32 %v1553_v21, %v1550_v5  ;;  %v1404_v30 = vshrl.u32 %v1358_v45, 16  ;;  %2111 = vmatpush.bf16.msra.mxu1 %v2590_v6  ;;  %2608 = vmatpush.bf16.msra.mxu3 %v2590_v6  ;;  %v1413_v45 = vshll.u32 %v1359_v55, 16  ;;  %v2499_v5 = vld [vmem:[%s2859_s7 + $0x50] sm:$0xe]  ;;  %v2587_v55 = vld [vmem:[%s3881_s1 + $0x40] sm:$0xff] }
  0xfb   : > { %v2498_v21 = vld [vmem:[%s2859_s7 + $0x48] sm:$0xe] }
  0xfc   : > { %1283 = vrot.lane.b32.xlu2 %v1254_v15, %s2767_s10  ;;  %v1408_v31 = vrot.slane %v1406_v11, 1  ;;  %v2436_v11 = vld [vmem:[%s2859_s7 + $0x44] sm:$0x3] }
  0xfd   : > { %976 = vrot.lane.b32.xlu1 %v917_v44, %s2771_s14  ;;  %974 = vrot.lane.b32.xlu0 %v909_v2, %s2771_s14  ;;  %v891_v7 = vunpack.c.l.b16 %v2436_v11 }
  0xfe   : > { %v3433_v58 = vpop.permute.xlu2 %1271  ;;  %v1409_v2 = vor.u32 %v1408_v31, %v1404_v30  ;;  %2112 = vmatpush.bf16.msra.mxu1 %v2589_v26  ;;  %2609 = vmatpush.bf16.msra.mxu3 %v2589_v26  ;;  %v1457_v30 = vunpack.c.l.b16 %v2498_v21  ;;  %v3533_v26 = vld [vmem:[%s2859_s7 + $0x3c] sm:$0x1] }
  0xff   : > { %v3438_v8 = vpop.permute.xlu1 %811  ;;  %v810_v27 = vpop.permute.xlu0 %809  ;;  %v1021_v11 = vunpack.c.l.b16 %v3533_v26 }
 0x100   : > { %v3442_v0 = vsel %vm1698_vm4, %v3372_v63, %v810_v27  ;;  %v3452_v63 = vld [vmem:[%s2859_s7 + $0x40] sm:$0xe]  ;;  %v1415_v27 = vrot.slane %v1413_v45, 1 }
 0x101   : > { %v837_v49 = vunpack.c.l.b16 %v3452_v63  ;;  %v2583_v63 = vld [vmem:[%s3881_s1 + $0x20] sm:$0xff] }
 0x102   : > { %2113 = vmatpush.bf16.msra.mxu1 %v2588_v50  ;;  %2610 = vmatpush.bf16.msra.mxu3 %v2588_v50  ;;  %v1416_v16 = vor.u32 %v1415_v27, %v1411_v60  ;;  %v1019_v60 = vunpack.c.l.b16 %v2451_v4  ;;  %v2579_v4 = vld [vmem:[%s3881_s1] sm:$0xff] }
 0x103   : > { %v846_v59 = vpack.c.b16 %v729_v47, %v837_v49 }
 0x104   : > { %1601 = vrot.lane.b32.xlu2 %v1554_v14, %s2771_s14 }
 0x105   : > { %1599 = vrot.lane.b32.xlu1 %v1546_v1, %s2771_s14  ;;  %1285 = vrot.lane.b32.xlu0 %v1262_v57, %s2767_s10  ;;  %v1458_v57 = vunpack.c.l.b16 %v2499_v5  ;;  %v855_v31 = vrot.slane %v846_v59, 1 }
 0x106   : > { %v3465_v15 = vpop.permute.xlu2 %1318  ;;  %2114 = vmatpush.bf16.msra.mxu1 %v2587_v55  ;;  %2611 = vmatpush.bf16.msra.mxu3 %v2587_v55 }
 0x107   : > { %v818_v56 = vpop.permute.xlu1 %817  ;;  %v816_v44 = vpop.permute.xlu0 %815 }
 0x108   : > { %v3469_v32 = vsel %vm1698_vm4, %v3392_v25, %v818_v56  ;;  %v3473_v51 = vsel %vm1698_vm4, %v3396_v33, %v816_v44  ;;  %v1313_v25 = vpack.c.b16 %v3410_v39, %v3410_v39  ;;  %v899_v33 = vpack.c.b16 %v890_v40, %v836_v52  ;;  %v2584_v39 = vld [vmem:[%s3881_s1 + $0x28] sm:$0xff] }
 0x109   : > { %2598 = vmatpush.bf16.msra.mxu2 %v2584_v39  ;;  %2076 = vmatpush.bf16.msra.mxu0 %v2584_v39  ;;  %v1466_v56 = vpack.c.b16 %v1349_v18, %v1457_v30  ;;  %v1521_v44 = vpack.c.b16 %v1512_v62, %v1458_v57  ;;  %v900_v52 = vpack.c.b16 %v891_v7, %v837_v49  ;;  %v3530_v18 = vld [vmem:[%s2859_s7 + $0x38] sm:$0xf] }
 0x10a   : > { %v951_v14 = vshrl.u32 %v899_v33, 16  ;;  %v954_v36 = vshll.u32 %v899_v33, 16  ;;  %v1020_v27 = vunpack.c.l.b16 %v3530_v18 }
 0x10b   : > { %v1475_v33 = vrot.slane %v1466_v56, 1  ;;  %v1580_v5 = vshrl.u32 %v1521_v44, 16  ;;  %v1583_v21 = vshll.u32 %v1521_v44, 16  ;;  %v959_v13 = vshrl.u32 %v900_v52, 16 }
 0x10c   : > { %1436 = vrot.lane.b32.xlu2 %v1409_v2, %s2769_s12  ;;  %v953_v6 = vrot.slane %v951_v14, 1  ;;  %v956_v40 = vrot.slane %v954_v36, 2  ;;  %v1520_v2 = vpack.c.b16 %v1511_v19, %v1457_v30  ;;  %v962_v39 = vshll.u32 %v900_v52, 16  ;;  %v3549_v14 = vld [vmem:[%s2859_s7 + $0x38] sm:$0xe] }
 0x10d   : > { %1330 = vrot.lane.b32.xlu1 %v1314_v34, %s2768_s11  ;;  %1328 = vrot.lane.b32.xlu0 %v1313_v25, %s2768_s11  ;;  %v3536_v34 = vld [vmem:[%s2859_s7 + $0x30] sm:$0xf]  ;;  %v2470_v36 = vld [vmem:[%s2859_s7 + $0x3c] sm:$0x3]  ;;  %v961_v19 = vrot.slane %v959_v13, 1 }
 0x10e   : > { %v3502_v47 = vpop.permute.xlu2 %1478  ;;  %2599 = vmatpush.bf16.msra.mxu2 %v2583_v63  ;;  %2077 = vmatpush.bf16.msra.mxu0 %v2583_v63  ;;  %v957_v10 = vor.u32 %v956_v40, %v953_v6  ;;  %v1572_v59 = vshrl.u32 %v1520_v2, 16  ;;  %v1575_v46 = vshll.u32 %v1520_v2, 16  ;;  %v1018_v50 = vunpack.c.l.b16 %v3536_v34  ;;  %v2460_v63 = vld [vmem:[%s2859_s7 + $0x30] sm:$0xe] }
 0x10f   : > { %v3504_v17 = vpop.permute.xlu1 %1100  ;;  %v858_v1 = vpop.permute.xlu0 %857  ;;  %v964_v7 = vrot.slane %v962_v39, 2  ;;  %v1132_v6 = vunpack.c.l.b16 %v3549_v14  ;;  %v1186_v40 = vunpack.c.l.b16 %v2470_v36  ;;  %v3575_v14 = vld [vmem:[%s2859_s7 + $0x54] sm:$0x1]  ;;  %v2679_v36 = vld [vmem:[%s2859_s7 + $0x10] sm:$0xf] }
 0x110   : > { %v3508_v48 = vsel %vm1717_vm5, %v3419_v53, %v858_v1  ;;  %v1467_v53 = vpack.c.b16 %v1350_v37, %v1458_v57  ;;  %v1582_v1 = vrot.slane %v1580_v5, 1  ;;  %v1585_v57 = vrot.slane %v1583_v21, 2 }
 0x111   : > { %v1574_v30 = vrot.slane %v1572_v59, 1  ;;  %v1577_v62 = vrot.slane %v1575_v46, 2  ;;  %v1195_v21 = vpack.c.b16 %v1186_v40, %v1132_v6  ;;  %v1027_v40 = vunpack.c.l.b16 %v3575_v14 }
 0x112   : > { %2600 = vmatpush.bf16.msra.mxu2 %v2582_v24  ;;  %2078 = vmatpush.bf16.msra.mxu0 %v2582_v24  ;;  %v1476_v45 = vrot.slane %v1467_v53, 1  ;;  %v2469_v53 = vld [vmem:[%s2859_s7 + $0x34] sm:$0x3]  ;;  %v1586_v2 = vor.u32 %v1585_v57, %v1582_v1  ;;  %v1131_v24 = vunpack.c.l.b16 %v2460_v63  ;;  %v1757_v1 = vsel %vm1613_vm0, %v2679_v36, %v3504_v17 }
 0x113   : > { %v1578_v52 = vor.u32 %v1577_v62, %v1574_v30  ;;  %v1185_v5 = vunpack.c.l.b16 %v2469_v53 }
 0x114   : > { %871 = vrot.lane.b32.xlu2 %v855_v31, %s2770_s13  ;;  %v2580_v31 = vld [vmem:[%s3881_s1 + $0x8] sm:$0xff]  ;;  %v1140_v59 = vpack.c.b16 %v1019_v60, %v1131_v24 }
 0x115   : > { %869 = vrot.lane.b32.xlu1 %v854_v61, %s2770_s13  ;;  %1438 = vrot.lane.b32.xlu0 %v1416_v16, %s2769_s12  ;;  %v1033_v61 = vpack.c.b16 %v1021_v11, %v1020_v27  ;;  %v1032_v16 = vpack.c.b16 %v1019_v60, %v1018_v50  ;;  %v1194_v27 = vpack.c.b16 %v1185_v5, %v1131_v24  ;;  %v3572_v50 = vld [vmem:[%s2859_s7 + $0x50] sm:$0xf]  ;;  %v1240_v60 = vshrl.u32 %v1195_v21, 16 }
 0x116   : > { %v3527_v37 = vpop.permute.xlu2 %1597  ;;  %2601 = vmatpush.bf16.msra.mxu2 %v2581_v28  ;;  %2079 = vmatpush.bf16.msra.mxu0 %v2581_v28 }
 0x117   : > { %v3538_v49 = vpop.permute.xlu1 %1156  ;;  %v3540_v25 = vpop.permute.xlu0 %1154  ;;  %v1073_v46 = vshrl.u32 %v1033_v61, 16  ;;  %v1066_v13 = vshrl.u32 %v1032_v16, 16 }
 0x118   : > { %v1783_v30 = vsel %vm1641_vm1, %v1757_v1, %v3540_v25 }
 0x119   : > { %v1801_v24 = vsel %vm1660_vm2, %v1783_v30, %v3433_v58 }
 0x11a   : > { %2602 = vmatpush.bf16.msra.mxu2 %v2580_v31  ;;  %2080 = vmatpush.bf16.msra.mxu0 %v2580_v31 }
 0x11c   : > { %986 = vrot.lane.b32.xlu2 %v957_v10, %s2771_s14  ;;  %v965_v10 = vor.u32 %v964_v7, %v961_v19  ;;  %v1243_v19 = vshll.u32 %v1195_v21, 16  ;;  %v2680_v7 = vld [vmem:[%s2859_s7 + $0x18] sm:$0xf] }
 0x11d   : > { %1492 = vrot.lane.b32.xlu1 %v1476_v45, %s2770_s13  ;;  %1490 = vrot.lane.b32.xlu0 %v1475_v33, %s2770_s13  ;;  %v1075_v45 = vshll.u32 %v1033_v61, 16  ;;  %v1068_v33 = vshll.u32 %v1032_v16, 16  ;;  %v1760_v63 = vsel %vm1613_vm0, %v2680_v7, %v3408_v20  ;;  %v1149_v61 = vrot.slane %v1140_v59, 1 }
 0x11e   : > { %v3561_v55 = vpop.permute.xlu2 %982  ;;  %2603 = vmatpush.bf16.msra.mxu2 %v2579_v4  ;;  %2081 = vmatpush.bf16.msra.mxu0 %v2579_v4  ;;  %v1026_v16 = vunpack.c.l.b16 %v3572_v50  ;;  %v1785_v25 = vsel %vm1641_vm1, %v1760_v63, %v3538_v49  ;;  %v1242_v4 = vrot.slane %v1240_v60, 1  ;;  %v2478_v60 = vld [vmem:[%s2859_s7 + $0x38] sm:$0xf] }
 0x11f   : > { %v1317_v56 = vpop.permute.xlu1 %1316  ;;  %v1274_v44 = vpop.permute.xlu0 %1273  ;;  %v1077_v39 = vrot.slane %v1075_v45, 1  ;;  %v1070_v28 = vrot.slane %v1068_v33, 1  ;;  %v1245_v45 = vrot.slane %v1243_v19, 2  ;;  %v1141_v33 = vpack.c.b16 %v1021_v11, %v1132_v6  ;;  %v3611_v6 = vld [vmem:[%s2859_s7 + $0x3c] sm:$0x1] }
 0x120   : > { %v1819_v20 = vsel %vm1679_vm3, %v1801_v24, %v1317_v56  ;;  %v1036_v49 = vpack.c.b16 %v1027_v40, %v1026_v16 }
 0x121   : > { %v1078_v53 = vor.u32 %v1077_v39, %v1073_v46  ;;  %v1071_v17 = vor.u32 %v1070_v28, %v1066_v13  ;;  %v1246_v39 = vor.u32 %v1245_v45, %v1242_v4  ;;  %v1150_v28 = vrot.slane %v1141_v33, 1 }
 0x124   : > { %1609 = vrot.lane.b32.xlu2 %v1586_v2, %s2771_s14  ;;  %v1232_v2 = vshrl.u32 %v1194_v27, 16 }
 0x125   : > { %1607 = vrot.lane.b32.xlu1 %v1578_v52, %s2771_s14  ;;  %988 = vrot.lane.b32.xlu0 %v965_v10, %s2771_s14  ;;  %v1235_v52 = vshll.u32 %v1194_v27, 16  ;;  %v1803_v10 = vsel %vm1660_vm2, %v1785_v25, %v1274_v44  ;;  %v3604_v44 = vld [vmem:[%s2859_s7 + $0x44] sm:$0x1]  ;;  %v2479_v27 = vld [vmem:[%s2859_s7 + $0x40] sm:$0xf] }
 0x126   : > { %v3580_v57 = vpop.permute.xlu2 %1106  ;;  %v1234_v58 = vrot.slane %v1232_v2, 1  ;;  %v1821_v26 = vsel %vm1679_vm3, %v1803_v10, %v3465_v15  ;;  %v1096_v15 = vshll.u32 %v1036_v49, 16  ;;  %v1348_v30 = vunpack.c.l.b16 %v3604_v44  ;;  %v2422_v2 = vld [vmem:[%s2859_s7 + $0x18] sm:$0xe] }
 0x127   : > { %v1427_v62 = vpop.permute.xlu1 %1426  ;;  %v1425_v31 = vpop.permute.xlu0 %1424  ;;  %v1237_v56 = vrot.slane %v1235_v52, 2  ;;  %v1303_v63 = vunpack.c.l.b16 %v2479_v27  ;;  %v2464_v27 = vld [vmem:[%s2859_s7 + $0x50] sm:$0xe] }
 0x128   : > { %v1837_v5 = vsel %vm1698_vm4, %v1819_v20, %v1425_v31  ;;  %v1839_v21 = vsel %vm1698_vm4, %v1821_v26, %v1427_v62  ;;  %v832_v20 = vunpack.c.l.b16 %v2422_v2 }
 0x129   : > { %v1855_v46 = vsel %vm1717_vm5, %v1837_v5, %v3502_v47  ;;  %v1238_v19 = vor.u32 %v1237_v56, %v1234_v58  ;;  %v1347_v47 = vunpack.c.l.b16 %v3611_v6  ;;  %v1357_v52 = vpack.c.b16 %v1348_v30, %v1303_v63  ;;  %v2432_v6 = vld [vmem:[%s2859_s7 + $0x24] sm:$0x3] }
 0x12a   : > { %v1312_v33 = vpack.c.b16 %v1303_v63, %v1303_v63  ;;  %v1708_v58 = vsel %vm1698_vm4, %v3368_v54, %v3438_v8  ;;  %v841_v26 = vpack.c.b16 %v724_v29, %v832_v20  ;;  %v2423_v54 = vld [vmem:[%s2859_s7 + $0x20] sm:$0xe] }
 0x12b   : > { %v1399_v45 = vshll.u32 %v1357_v52, 16  ;;  %v833_v12 = vunpack.c.l.b16 %v2423_v54 }
 0x12c   : > { %1162 = vrot.lane.b32.xlu2 %v1149_v61, %s2766_s9  ;;  %v1302_v61 = vunpack.c.l.b16 %v2478_v60 }
 0x12d   : > { %1110 = vrot.lane.b32.xlu1 %v1078_v53, %s2765_s8  ;;  %1108 = vrot.lane.b32.xlu0 %v1071_v17, %s2765_s8  ;;  %v1094_v53 = vshrl.u32 %v1036_v49, 16  ;;  %v1098_v17 = vrot.slane %v1096_v15, 1 }
 0x12e   : > { %v3608_v11 = vpop.permute.xlu2 %1275  ;;  %v1311_v5 = vpack.c.b16 %v1302_v61, %v1302_v61 }
 0x12f   : > { %v1596_v59 = vpop.permute.xlu1 %1595  ;;  %v1481_v13 = vpop.permute.xlu0 %1480  ;;  %v1099_v10 = vor.u32 %v1098_v17, %v1094_v53 }
 0x130   : > { %v1873_v36 = vsel %vm1736_vm6, %v1855_v46, %v1596_v59  ;;  %v1857_v1 = vsel %vm1717_vm5, %v1839_v21, %v1481_v13  ;;  %v1397_v21 = vshrl.u32 %v1357_v52, 16  ;;  %v1401_v59 = vrot.slane %v1399_v45, 1  ;;  %v2431_v46 = vld [vmem:[%s2859_s7 + $0x1c] sm:$0x3] }
 0x131   : > { %v1909_v31 = vunpack.c.l.b16 %v1873_v36  ;;  %v1875_v62 = vsel %vm1736_vm6, %v1857_v1, %v3527_v37  ;;  %v1356_v37 = vpack.c.b16 %v1347_v47, %v1302_v61  ;;  %v887_v36 = vunpack.c.l.b16 %v2432_v6 }
 0x132   : > { %v1911_v7 = vunpack.c.l.b16 %v1875_v62 }
 0x133   : > { %v1392_v49 = vshll.u32 %v1356_v37, 16  ;;  %v1390_v13 = vshrl.u32 %v1356_v37, 16  ;;  %v896_v53 = vpack.c.b16 %v887_v36, %v833_v12  ;;  %v2497_v37 = vld [vmem:[%s2859_s7 + $0x40] sm:$0xe]  ;;  %v2482_v36 = vld [vmem:[%s2859_s7 + $0x58] sm:$0xf] }
 0x134   : > { %1281 = vrot.lane.b32.xlu2 %v1246_v39, %s2767_s10  ;;  %v1959_v16 = vpack.c.b16 %v1911_v7, %v1909_v31  ;;  %v850_v31 = vrot.slane %v841_v26, 1  ;;  %v1402_v7 = vor.u32 %v1401_v59, %v1397_v21  ;;  %v1456_v6 = vunpack.c.l.b16 %v2497_v37 }
 0x135   : > { %1279 = vrot.lane.b32.xlu1 %v1238_v19, %s2767_s10  ;;  %1164 = vrot.lane.b32.xlu0 %v1150_v28, %s2766_s9  ;;  %v1394_v39 = vrot.slane %v1392_v49, 1  ;;  %v2496_v28 = vld [vmem:[%s2859_s7 + $0x38] sm:$0xe]  ;;  %v886_v19 = vunpack.c.l.b16 %v2431_v46 }
 0x136   : > { %2115 = vmatmul.bf16.vlgmr.msra.gmra.mxu1 %v1959_v16  ;;  %v3630_v25 = vpop.permute.xlu2 %1322  ;;  %v1455_v63 = vunpack.c.l.b16 %v2496_v28  ;;  %v1465_v54 = vpack.c.b16 %v1348_v30, %v1456_v6 }
 0x137   : > { %v868_v24 = vpop.permute.xlu1 %867  ;;  %v866_v4 = vpop.permute.xlu0 %865  ;;  %v1395_v61 = vor.u32 %v1394_v39, %v1390_v13  ;;  %v895_v2 = vpack.c.b16 %v886_v19, %v832_v20  ;;  %v2505_v20 = vld [vmem:[%s2859_s7 + $0x3c] sm:$0x3] }
 0x138   : > { %v1727_v56 = vsel %vm1717_vm5, %v1708_v58, %v866_v4  ;;  %v1729_v1 = vsel %vm1717_vm5, %v1710_v9, %v868_v24  ;;  %v1464_v52 = vpack.c.b16 %v1347_v47, %v1455_v63  ;;  %v842_v4 = vpack.c.b16 %v725_v38, %v833_v12 }
 0x139   : > { %v1746_v29 = vsel %vm1736_vm6, %v1727_v56, %v3561_v55  ;;  %v1135_v55 = vunpack.c.l.b16 %v2464_v27  ;;  %v930_v58 = vshll.u32 %v896_v53, 16  ;;  %v919_v56 = vshrl.u32 %v895_v2, 16 }
 0x13a   : > { %v1916_v16 = vunpack.c.l.b16 %v1746_v29  ;;  %v922_v26 = vshll.u32 %v895_v2, 16  ;;  %v1473_v14 = vrot.slane %v1464_v52, 1  ;;  %v851_v38 = vrot.slane %v842_v4, 1 }
 0x13b   : > { %v1144_v24 = vpack.c.b16 %v1027_v40, %v1135_v55  ;;  %v1509_v21 = vunpack.c.l.b16 %v2505_v20  ;;  %v932_v13 = vrot.slane %v930_v58, 2  ;;  %v921_v39 = vrot.slane %v919_v56, 1 }
 0x13c   : > { %1116 = vrot.lane.b32.xlu2 %v1099_v10, %s2765_s8  ;;  %v2506_v10 = vld [vmem:[%s2859_s7 + $0x44] sm:$0x3]  ;;  %v924_v28 = vrot.slane %v922_v26, 2 }
 0x13d   : > { %1326 = vrot.lane.b32.xlu1 %v1312_v33, %s2768_s11  ;;  %1324 = vrot.lane.b32.xlu0 %v1311_v5, %s2768_s11  ;;  %v927_v33 = vshrl.u32 %v896_v53, 16  ;;  %v2473_v5 = vld [vmem:[%s2859_s7 + $0x54] sm:$0x3]  ;;  %v1510_v40 = vunpack.c.l.b16 %v2506_v10  ;;  %v1153_v23 = vrot.slane %v1144_v24, 1  ;;  %v1518_v29 = vpack.c.b16 %v1509_v21, %v1455_v63  ;;  %v2500_v21 = vld [vmem:[%s2859_s7 + $0x58] sm:$0xe] }
 0x13e   : > { %v3648_v8 = vpop.permute.xlu2 %1428  ;;  %v1189_v59 = vunpack.c.l.b16 %v2473_v5  ;;  %v925_v30 = vor.u32 %v924_v28, %v921_v39  ;;  %v2437_v5 = vld [vmem:[%s2859_s7 + $0x4c] sm:$0x3]  ;;  %v2509_v39 = vld [vmem:[%s2859_s7 + $0x5c] sm:$0x3] }
 0x13f   : > { %v3654_v15 = vpop.permute.xlu1 %1104  ;;  %v985_v60 = vpop.permute.xlu0 %984  ;;  %v929_v46 = vrot.slane %v927_v33, 1  ;;  %v1519_v9 = vpack.c.b16 %v1510_v40, %v1456_v6  ;;  %v1556_v63 = vshrl.u32 %v1518_v29, 16  ;;  %v2428_v33 = vld [vmem:[%s2859_s7 + $0x48] sm:$0xe] }
 0x140   : > { %v1748_v62 = vsel %vm1736_vm6, %v1729_v1, %v985_v60  ;;  %v1198_v27 = vpack.c.b16 %v1189_v59, %v1135_v55  ;;  %v3681_v1 = vld [vmem:[%s2859_s7 + $0x5c] sm:$0x1]  ;;  %v838_v6 = vunpack.c.l.b16 %v2428_v33 }
 0x141   : > { %v1918_v22 = vunpack.c.l.b16 %v1748_v62  ;;  %v933_v44 = vor.u32 %v932_v13, %v929_v46  ;;  %v1474_v62 = vrot.slane %v1465_v54, 1  ;;  %v1567_v12 = vshll.u32 %v1519_v9, 16 }
 0x142   : > { %v1264_v55 = vshrl.u32 %v1198_v27, 16  ;;  %v1267_v53 = vshll.u32 %v1198_v27, 16  ;;  %v1558_v37 = vrot.slane %v1556_v63, 1  ;;  %v847_v59 = vpack.c.b16 %v730_v43, %v838_v6 }
 0x143   : > { %v1962_v17 = vpack.c.b16 %v1918_v22, %v1916_v16  ;;  %v1306_v22 = vunpack.c.l.b16 %v2482_v36  ;;  %v1559_v16 = vshll.u32 %v1518_v29, 16  ;;  %v1569_v2 = vrot.slane %v1567_v12, 2 }
 0x144   : > { %861 = vrot.lane.b32.xlu2 %v850_v31, %s2770_s13  ;;  %v1266_v4 = vrot.slane %v1264_v55, 1  ;;  %v1269_v10 = vrot.slane %v1267_v53, 2  ;;  %v1459_v54 = vunpack.c.l.b16 %v2500_v21 }
 0x145   : > { %1434 = vrot.lane.b32.xlu1 %v1402_v7, %s2769_s12  ;;  %1432 = vrot.lane.b32.xlu0 %v1395_v61, %s2769_s12  ;;  %v1564_v7 = vshrl.u32 %v1519_v9, 16  ;;  %v1351_v61 = vunpack.c.l.b16 %v3681_v1  ;;  %v1561_v24 = vrot.slane %v1559_v16, 2  ;;  %v1513_v9 = vunpack.c.l.b16 %v2509_v39 }
 0x146   : > { %2092 = vmatmul.bf16.vlgmr.msra.gmra.mxu2 %v1962_v17  ;;  %v3666_v45 = vpop.permute.xlu2 %1166 }
 0x147   : > { %v3670_v49 = vpop.permute.xlu1 %1160  ;;  %v3672_v47 = vpop.permute.xlu0 %1158  ;;  %v1566_v17 = vrot.slane %v1564_v7, 1  ;;  %v1360_v52 = vpack.c.b16 %v1351_v61, %v1306_v22  ;;  %v1562_v40 = vor.u32 %v1561_v24, %v1558_v37  ;;  %v1522_v1 = vpack.c.b16 %v1513_v9, %v1459_v54 }
 0x149   : > { %v1570_v26 = vor.u32 %v1569_v2, %v1566_v17  ;;  %v1418_v46 = vshrl.u32 %v1360_v52, 16  ;;  %v1588_v43 = vshrl.u32 %v1522_v1, 16  ;;  %v1591_v12 = vshll.u32 %v1522_v1, 16 }
 0x14a   : > { %v1468_v17 = vpack.c.b16 %v1351_v61, %v1459_v54  ;;  %v2682_v61 = vld [vmem:[%s2859_s7 + $0x20] sm:$0xf] }
 0x14b   : > { %v1590_v63 = vrot.slane %v1588_v43, 1  ;;  %v1593_v16 = vrot.slane %v1591_v12, 2 }
 0x14c   : > { %1486 = vrot.lane.b32.xlu2 %v1473_v14, %s2770_s13  ;;  %v1420_v14 = vshll.u32 %v1360_v52, 16 }
 0x14d   : > { %1170 = vrot.lane.b32.xlu1 %v1153_v23, %s2766_s9  ;;  %863 = vrot.lane.b32.xlu0 %v851_v38, %s2770_s13  ;;  %v1270_v23 = vor.u32 %v1269_v10, %v1266_v4  ;;  %v892_v38 = vunpack.c.l.b16 %v2437_v5  ;;  %v1594_v37 = vor.u32 %v1593_v16, %v1590_v63  ;;  %v1477_v4 = vrot.slane %v1468_v17, 1  ;;  %v2681_v10 = vld [vmem:[%s2859_s7 + $0x28] sm:$0xf]  ;;  %s2705_s9 = scalar_lea.hbm %s3884_s4, 32 }
 0x14e   : > { %v3683_v60 = vpop.permute.xlu2 %1484  ;;  %v1422_v13 = vrot.slane %v1420_v14, 1  ;;  %v1766_v33 = vsel %vm1613_vm0, %v2681_v10, %v3580_v57  ;;  %p2707_p2 = scmp.lt.s32.totalorder %s2705_s9, %s2701_s18 }
 0x14f   : > { %v3685_v31 = vpop.permute.xlu1 %1320  ;;  %v3687_v19 = vpop.permute.xlu0 %1277  ;;  %v901_v28 = vpack.c.b16 %v892_v38, %v838_v6  ;;  %v1789_v5 = vsel %vm1641_vm1, %v1766_v33, %v3670_v49  ;;  %v1763_v6 = vsel %vm1613_vm0, %v2682_v61, %v3654_v15 }
 0x150   : > { %v1787_v14 = vsel %vm1641_vm1, %v1763_v6, %v3672_v47  ;;  %p2708_p3 = por %p2707_p2, %p2706_p1 }
 0x151   : > { %v967_v7 = vshrl.u32 %v901_v28, 16  ;;  %v970_v35 = vshll.u32 %v901_v28, 16  ;;  %v1805_v47 = vsel %vm1660_vm2, %v1787_v14, %v3608_v11 }
 0x152   : > { %p2709_p5 = pnand %p2708_p3, %p2704_p0 }
 0x153   : > { %v969_v55 = vrot.slane %v967_v7, 1  ;;  %v972_v53 = vrot.slane %v970_v35, 2  ;;  %v2683_v7 = vld [vmem:[%s2859_s7 + $0x40] sm:$0xf]  ;;  %v2684_v35 = vld [vmem:[%s2859_s7 + $0x48] sm:$0xf] }
 0x154   : > { %980 = vrot.lane.b32.xlu2 %v933_v44, %s2771_s14  ;;  %v856_v44 = vrot.slane %v847_v59, 1 }
 0x155   : > { %978 = vrot.lane.b32.xlu1 %v925_v30, %s2771_s14  ;;  %1488 = vrot.lane.b32.xlu0 %v1474_v62, %s2770_s13  ;;  %v1423_v30 = vor.u32 %v1422_v13, %v1418_v46  ;;  %v1315_v62 = vpack.c.b16 %v1306_v22, %v1306_v22  ;;  %v973_v24 = vor.u32 %v972_v53, %v969_v55 }
 0x156   : > { %v3694_v20 = vpop.permute.xlu2 %1283 }
 0x157   : > { %v3697_v58 = vpop.permute.xlu1 %1114  ;;  %v3699_v56 = vpop.permute.xlu0 %1112 }
 0x158   : > { %v1778_v43 = vsel %vm1613_vm0, %v2684_v35, %v3697_v58 }
 0x15c   : > { %1605 = vrot.lane.b32.xlu2 %v1570_v26, %s2771_s14  ;;  %v1807_v26 = vsel %vm1660_vm2, %v1789_v5, %v3687_v19 }
 0x15d   : > { %1603 = vrot.lane.b32.xlu1 %v1562_v40, %s2771_s14  ;;  %1287 = vrot.lane.b32.xlu0 %v1270_v23, %s2767_s10  ;;  %v1825_v49 = vsel %vm1679_vm3, %v1807_v26, %v3630_v25 }
 0x15e   : > { %v1602_v29 = vpop.permute.xlu2 %1601 }
 0x15f   : > { %v860_v27 = vpop.permute.xlu1 %859  ;;  %v1431_v36 = vpop.permute.xlu0 %1430 }
 0x160   : > { %v1721_v57 = vsel %vm1717_vm5, %v3415_v41, %v860_v27  ;;  %v1843_v23 = vsel %vm1698_vm4, %v1825_v49, %v1431_v36  ;;  %v1823_v41 = vsel %vm1679_vm3, %v1805_v47, %v3685_v31 }
 0x161   : > { %v1861_v25 = vsel %vm1717_vm5, %v1843_v23, %v3683_v60  ;;  %v1841_v39 = vsel %vm1698_vm4, %v1823_v41, %v3648_v8 }
 0x164   : > { %873 = vrot.lane.b32.xlu2 %v856_v44, %s2770_s13 }
 0x165   : > { %1440 = vrot.lane.b32.xlu1 %v1423_v30, %s2769_s12  ;;  %1332 = vrot.lane.b32.xlu0 %v1315_v62, %s2768_s11  ;;  %s202_s12 = sand.u32 1, %s2747_s16  }
 0x166   : > { %v1437_v22 = vpop.permute.xlu2 %1436  ;;  %s2291_s5 = scalar_lea.sflag [#allocation4], %s202_s12 }
 0x167   : > { %v1483_v2 = vpop.permute.xlu1 %1482  ;;  %v1169_v52 = vpop.permute.xlu0 %1168 }
 0x168   : > { %v1859_v28 = vsel %vm1717_vm5, %v1841_v39, %v1483_v2  ;;  %v1797_v63 = vsel %vm1641_vm1, %v1778_v43, %v1169_v52 }
 0x16c   : > { %1611 = vrot.lane.b32.xlu2 %v1594_v37, %s2771_s14 }
 0x16d   : > { %990 = vrot.lane.b32.xlu1 %v973_v24, %s2771_s14  ;;  %1494 = vrot.lane.b32.xlu0 %v1477_v4, %s2770_s13  ;;  %s2400_s13 = sshll.u32 %s202_s12, 4 }
 0x16e   : > { %v872_v46 = vpop.permute.xlu2 %871  ;;  %s3829_s14 = scalar_lea.vmem [#allocation3], %s2400_s13 }
 0x16f   : > { %v977_v19 = vpop.permute.xlu1 %976  ;;  %v975_v40 = vpop.permute.xlu0 %974  ;;  %v1733_v33 = vsel %vm1717_vm5, %v3469_v32, %v872_v46  ;;  %s2305_s29 = sshll.u32 %s3829_s14, 4  ;;  %s2306_s29 = int_to_ptr.vmem [resolvable:$true] %s2305_s29 }
 0x170   : > { %v1740_v38 = vsel %vm1736_vm6, %v1721_v57, %v977_v19  ;;  %v1738_v21 = vsel %vm1736_vm6, %v3508_v48, %v975_v40  ;;  %v1879_v48 = vsel %vm1736_vm6, %v1861_v25, %v1602_v29  ;;  %v1775_v29 = vsel %vm1613_vm0, %v2683_v7, %v3699_v56 }
 0x171   : > { %v1910_v59 = vunpack.c.l.b16 %v1740_v38  ;;  %v1908_v15 = vunpack.c.l.b16 %v1738_v21  ;;  %v1915_v31 = vunpack.c.l.b16 %v1879_v48  ;;  %v1795_v12 = vsel %vm1641_vm1, %v1775_v29, %v3666_v45 }
 0x172   : > { %v1813_v37 = vsel %vm1660_vm2, %v1795_v12, %v3694_v20 }
 0x173   : > { %v1958_v13 = vpack.c.b16 %v1910_v59, %v1908_v15 }
 0x175   : > { %2082 = vmatmul.bf16.vlgmr.msra.gmra.mxu0 %v1958_v13 }
 0x176   : > { %v987_v1 = vpop.permute.xlu2 %986 }
 0x177   : > { %v1600_v54 = vpop.permute.xlu1 %1599  ;;  %v1286_v11 = vpop.permute.xlu0 %1285 }
 0x178   : > { %v1877_v9 = vsel %vm1736_vm6, %v1859_v28, %v1600_v54  ;;  %v1815_v53 = vsel %vm1660_vm2, %v1797_v63, %v1286_v11 }
 0x179   : > { %v1913_v27 = vunpack.c.l.b16 %v1877_v9 }
 0x17b   : > { %v1961_v36 = vpack.c.b16 %v1915_v31, %v1913_v27 }
 0x17d   : > { %2120 = vmatmul.bf16.gmra.mxu1 %v1961_v36 }
 0x17e   : > { %v1610_v30 = vpop.permute.xlu2 %1609 }
 0x17f   : > { %v1331_v60 = vpop.permute.xlu1 %1330  ;;  %v1329_v44 = vpop.permute.xlu0 %1328 }
 0x180   : > { %v1833_v2 = vsel %vm1679_vm3, %v1815_v53, %v1331_v60  ;;  %v1831_v24 = vsel %vm1679_vm3, %v1813_v37, %v1329_v44 }
 0x181   : > { %v1849_v52 = vsel %vm1698_vm4, %v1831_v24, %v1437_v22 }
 0x186   : > { %v1163_v17 = vpop.permute.xlu2 %1162 }
 0x187   : > { %v870_v62 = vpop.permute.xlu1 %869  ;;  %v1439_v8 = vpop.permute.xlu0 %1438 }
 0x188   : > { %v1851_v56 = vsel %vm1698_vm4, %v1833_v2, %v1439_v8  ;;  %v1731_v58 = vsel %vm1717_vm5, %v3473_v51, %v870_v62 }
 0x189   : > { %v1750_v4 = vsel %vm1736_vm6, %v1731_v58, %v987_v1 }
 0x18a   : > { %v1920_v57 = vunpack.c.l.b16 %v1750_v4 }
 0x18e   : > { %v1282_v22 = vpop.permute.xlu2 %1281 }
 0x18f   : > { %v1493_v16 = vpop.permute.xlu1 %1492  ;;  %v1491_v55 = vpop.permute.xlu0 %1490 }
 0x190   : > { %v1869_v45 = vsel %vm1717_vm5, %v1851_v56, %v1493_v16  ;;  %v1867_v20 = vsel %vm1717_vm5, %v1849_v52, %v1491_v55 }
 0x191   : > { %v1887_v10 = vsel %vm1736_vm6, %v1869_v45, %v1610_v30 }
 0x192   : > { %v1923_v49 = vunpack.c.l.b16 %v1887_v10 }
 0x196   : > { %v1117_v32 = vpop.permute.xlu2 %1116 }
 0x197   : > { %v1608_v5 = vpop.permute.xlu1 %1607  ;;  %v989_v26 = vpop.permute.xlu0 %988  ;;  %v1781_v4 = vsel %vm1613_vm0, %v3572_v50, %v1117_v32 }
 0x198   : > { %v1885_v61 = vsel %vm1736_vm6, %v1867_v20, %v1608_v5  ;;  %v1752_v6 = vsel %vm1736_vm6, %v1733_v33, %v989_v26 }
 0x199   : > { %v1921_v51 = vunpack.c.l.b16 %v1885_v61  ;;  %v1922_v14 = vunpack.c.l.b16 %v1752_v6 }
 0x19b   : > { %v1964_v19 = vpack.c.b16 %v1922_v14, %v1920_v57  ;;  %v1965_v40 = vpack.c.b16 %v1923_v49, %v1921_v51 }
 0x19d   : > { %2097 = vmatmul.bf16.gmra.mxu2 %v1964_v19  ;;  %2130 = vmatmul.bf16.vlgmr.msra.gmra.mxu3 %v1965_v40 }
 0x19e   : > { %v862_v15 = vpop.permute.xlu2 %861 }
 0x19f   : > { %v1111_v23 = vpop.permute.xlu1 %1110  ;;  %v1109_v38 = vpop.permute.xlu0 %1108  ;;  %v1723_v1 = vsel %vm1717_vm5, %v3343_v3, %v862_v15 }
 0x1a0   : > { %v1772_v9 = vsel %vm1613_vm0, %v3530_v18, %v1111_v23  ;;  %v1769_v31 = vsel %vm1613_vm0, %v3536_v34, %v1109_v38  ;;  %v2772_v38 = vmov 0.0  }
 0x1a1   : > { %2247 = vst [vmem:[#allocation2] sm:$0x1] %v2772_v38 }
 0x1a2   : > { %2248 = vst [vmem:[#allocation2 + $0x10] sm:$0x1] %v2772_v38 }
 0x1a3   : > { %2249 = vst [vmem:[#allocation2 + $0x20] sm:$0x1] %v2772_v38 }
 0x1a4   : > { %2250 = vst [vmem:[#allocation2 + $0x30] sm:$0x1] %v2772_v38 }
 0x1a6   : > { %v1487_v39 = vpop.permute.xlu2 %1486 }
 0x1a7   : > { %v1280_v21 = vpop.permute.xlu1 %1279  ;;  %v1165_v59 = vpop.permute.xlu0 %1164 }
 0x1a8   : > { %v1793_v27 = vsel %vm1641_vm1, %v1772_v9, %v1165_v59 }
 0x1a9   : > { %v1811_v30 = vsel %vm1660_vm2, %v1793_v27, %v1282_v22 }
 0x1ae   : > { %v981_v54 = vpop.permute.xlu2 %980 }
 0x1af   : > { %v1327_v47 = vpop.permute.xlu1 %1326  ;;  %v1325_v46 = vpop.permute.xlu0 %1324 }
 0x1b0   : > { %v1829_v18 = vsel %vm1679_vm3, %v1811_v30, %v1327_v47  ;;  %v3807_v47 = vld [vmem:[%s3882_s2] ss:$0 sm:$0xff] }
 0x1b3   : > { %v2116_v41 = vpop.f32.mrf.mxu1 }
 0x1b4   : > { %v3813_v41 = vld [vmem:[%s3883_s3] ss:$0 sm:$0xff] }
 0x1b6   : > { %v1606_v12 = vpop.permute.xlu2 %1605 }
 0x1b7   : > { %v1435_v25 = vpop.permute.xlu1 %1434  ;;  %v1433_v13 = vpop.permute.xlu0 %1432 }
 0x1b8   : > { %v1847_v34 = vsel %vm1698_vm4, %v1829_v18, %v1435_v25 }
 0x1be   : > { %v874_v58 = vpop.permute.xlu2 %873 }
 0x1bf   : > { %v1171_v48 = vpop.permute.xlu1 %1170  ;;  %v864_v28 = vpop.permute.xlu0 %863  ;;  %v1735_v26 = vsel %vm1717_vm5, %v3388_v42, %v874_v58 }
 0x1c0   : > { %v1725_v11 = vsel %vm1717_vm5, %v3442_v0, %v864_v28  ;;  %v1791_v0 = vsel %vm1641_vm1, %v1769_v31, %v1163_v17  ;;  %v1799_v10 = vsel %vm1641_vm1, %v1781_v4, %v1171_v48  ;;  %v2118_v42 = vpop.f32.mrf.mxu1 }
 0x1c1   : > { %v1744_v36 = vsel %vm1736_vm6, %v1725_v11, %v981_v54  ;;  %v1809_v29 = vsel %vm1660_vm2, %v1791_v0, %v1280_v21 }
 0x1c2   : > { %v1914_v7 = vunpack.c.l.b16 %v1744_v36  ;;  %v1827_v35 = vsel %vm1679_vm3, %v1809_v29, %v1325_v46 }
 0x1c3   : > { %v1845_v63 = vsel %vm1698_vm4, %v1827_v35, %v1433_v13 }
 0x1c4   : > { %v1863_v53 = vsel %vm1717_vm5, %v1845_v63, %v1487_v39 }
 0x1c6   : > { %v1612_v5 = vpop.permute.xlu2 %1611 }
 0x1c7   : > { %v979_v60 = vpop.permute.xlu1 %978  ;;  %v1489_v44 = vpop.permute.xlu0 %1488 }
 0x1c8   : > { %v1742_v62 = vsel %vm1736_vm6, %v1723_v1, %v979_v60  ;;  %v1865_v3 = vsel %vm1717_vm5, %v1847_v34, %v1489_v44 }
 0x1c9   : > { %v1912_v8 = vunpack.c.l.b16 %v1742_v62  ;;  %v1883_v16 = vsel %vm1736_vm6, %v1865_v3, %v1606_v12  ;;  %v2093_v59 = vpop.f32.mrf.mxu2 }
 0x1ca   : > { %v1919_v56 = vunpack.c.l.b16 %v1883_v16 }
 0x1cb   : > { %v1960_v43 = vpack.c.b16 %v1914_v7, %v1912_v8 }
 0x1cd   : > { %2087 = vmatmul.bf16.gmra.mxu0 %v1960_v43 }
 0x1cf   : > { %v1604_v55 = vpop.permute.xlu1 %1603  ;;  %v1288_v17 = vpop.permute.xlu0 %1287 }
 0x1d0   : > { %v1881_v2 = vsel %vm1736_vm6, %v1863_v53, %v1604_v55  ;;  %v1817_v33 = vsel %vm1660_vm2, %v1799_v10, %v1288_v17 }
 0x1d1   : > { %v1917_v37 = vunpack.c.l.b16 %v1881_v2  ;;  %v2095_v48 = vpop.f32.mrf.mxu2 }
 0x1d3   : > { %v1963_v24 = vpack.c.b16 %v1919_v56, %v1917_v37 }
 0x1d5   : > { %2125 = vmatmul.bf16.gmra.mxu1 %v1963_v24 }
 0x1d7   : > { %v1441_v45 = vpop.permute.xlu1 %1440  ;;  %v1333_v52 = vpop.permute.xlu0 %1332 }
 0x1d8   : > { %v1835_v20 = vsel %vm1679_vm3, %v1817_v33, %v1333_v52 }
 0x1d9   : > { %v1853_v6 = vsel %vm1698_vm4, %v1835_v20, %v1441_v45 }
 0x1df   : > { %v991_v61 = vpop.permute.xlu1 %990  ;;  %v1495_v51 = vpop.permute.xlu0 %1494 }
 0x1e0   : > { %v1754_v14 = vsel %vm1736_vm6, %v1735_v26, %v991_v61  ;;  %v1871_v57 = vsel %vm1717_vm5, %v1853_v6, %v1495_v51 }
 0x1e1   : > { %v1889_v50 = vsel %vm1736_vm6, %v1871_v57, %v1612_v5  ;;  %v1924_v49 = vunpack.c.l.b16 %v1754_v14 }
 0x1e2   : > { %v1925_v22 = vunpack.c.l.b16 %v1889_v50 }
 0x1e3   : > { %v1966_v19 = vpack.c.b16 %v1924_v49, %v1924_v49 }
 0x1e4   : > { %v1967_v40 = vpack.c.b16 %v1925_v22, %v1925_v22 }
 0x1e5   : > { %2102 = vmatmul.bf16.gmra.mxu2 %v1966_v19 }
 0x1e6   : > { %2135 = vmatmul.bf16.gmra.mxu3 %v1967_v40 }
 0x1f2   : > { %v2083_v23 = vpop.f32.mrf.mxu0 }
 0x1fa   : > { %v2085_v32 = vpop.f32.mrf.mxu0  ;;  %v2121_v21 = vpop.f32.mrf.mxu1 }
 0x1fb   : > { %v2119_v15 = vadd.f32 %v2118_v42, %v2085_v32 }
 0x1fd   : > { %v2145_v46 = vmul.f32 %v3807_v47, %v2119_v15 }
 0x1ff   : > { %v2158_v25 = vadd.f32 %v3813_v41, %v2145_v46 }
 0x201   : > { %v2167_v54 = vmax.f32 %v2158_v25, 0.0 }
 0x202   : > { %v2123_v13 = vpop.f32.mrf.mxu1 }
 0x203   : > { %v2239_v27 = vmax.f32 %v2167_v54, 0.0 }
 0x220   : > { %v2098_v60 = vpop.f32.mrf.mxu2  ;;  %v2131_v44 = vpop.f32.mrf.mxu3 }
 0x221   : > { %v2132_v7 = vadd.f32 %v2131_v44, %v2098_v60 }
 0x223   : > { %v2150_v43 = vmul.f32 %v3807_v47, %v2132_v7 }
 0x225   : > { %v2163_v58 = vadd.f32 %v3813_v41, %v2150_v43 }
 0x227   : > { %v2172_v20 = vmax.f32 %v2163_v58, 0.0 }
 0x228   : > { %v2100_v53 = vpop.f32.mrf.mxu2  ;;  %v2133_v17 = vpop.f32.mrf.mxu3 }
 0x229   : > { %v2134_v4 = vadd.f32 %v2133_v17, %v2100_v53 }
 0x22b   : > { %v2151_v26 = vmul.f32 %v3807_v47, %v2134_v4 }
 0x22d   : > { %v2164_v14 = vadd.f32 %v3813_v41, %v2151_v26 }
 0x22f   : > { %v2173_v23 = vmax.f32 %v2164_v14, 0.0 }
 0x24a   : > { %v2088_v39 = vpop.f32.mrf.mxu0 }
 0x24b   : > { %v2122_v28 = vadd.f32 %v2121_v21, %v2088_v39 }
 0x24d   : > { %v2146_v11 = vmul.f32 %v3807_v47, %v2122_v28 }
 0x24f   : > { %v2159_v9 = vadd.f32 %v3813_v41, %v2146_v11 }
 0x251   : > { %v2168_v31 = vmax.f32 %v2159_v9, 0.0 }
 0x252   : > { %v2090_v36 = vpop.f32.mrf.mxu0  ;;  %v2126_v1 = vpop.f32.mrf.mxu1 }
 0x253   : > { %v2243_v30 = vmax.f32 %v2239_v27, %v2168_v31  ;;  %v2124_v62 = vadd.f32 %v2123_v13, %v2090_v36  ;;  %v2127_v0 = vadd.f32 %v2126_v1, %v2093_v59  ;;  %v2242_v59 = vmax.f32 %v2172_v20, %v2173_v23 }
 0x255   : > { %2251 = vst [vmem:[#allocation2 + $0x1] sm:$0xff] %v2243_v30  ;;  %v2147_v18 = vmul.f32 %v3807_v47, %v2124_v62  ;;  %v2148_v8 = vmul.f32 %v3807_v47, %v2127_v0 }
 0x257   : > { %v2160_v29 = vadd.f32 %v3813_v41, %v2147_v18  ;;  %v2161_v34 = vadd.f32 %v3813_v41, %v2148_v8 }
 0x259   : > { %v2169_v35 = vmax.f32 %v2160_v29, 0.0  ;;  %v2170_v63 = vmax.f32 %v2161_v34, 0.0 }
 0x25a   : > { %v2128_v3 = vpop.f32.mrf.mxu1 }
 0x25b   : > { %v2240_v12 = vmax.f32 %v2168_v31, %v2169_v35  ;;  %v2129_v16 = vadd.f32 %v2128_v3, %v2095_v48 }
 0x25c   : > { %v2263_v55 = vld [vmem:[#allocation2 + $0x1] ss:$2 sm:$0xf]  ;;  %v2271_v56 = vld [vmem:[#allocation2 + $0x2] ss:$2 sm:$0xf] }
 0x25d   : > { %v2244_v2 = vmax.f32 %v2240_v12, %v2170_v63  ;;  %v2149_v37 = vmul.f32 %v3807_v47, %v2129_v16  ;;  %v2278_v24 = vmax.f32 %v2263_v55, %v2271_v56  ;;  %v2255_v52 = vld [vmem:[#allocation2] ss:$2 sm:$0xf] }
 0x25f   : > { %2252 = vst [vmem:[#allocation2 + $0x11] sm:$0xff] %v2244_v2  ;;  %v2162_v45 = vadd.f32 %v3813_v41, %v2149_v37  ;;  %v2282_v10 = vmax.f32 %v2278_v24, %v2255_v52 }
 0x261   : > { %v2171_v33 = vmax.f32 %v2162_v45, 0.0  ;;  %2286 = vst [vmem:[%s3829_s14] sm:$0xf] %v2282_v10 }
 0x263   : > { %v2241_v5 = vmax.f32 %v2170_v63, %v2171_v33 }
 0x265   : > { %v2245_v61 = vmax.f32 %v2241_v5, %v2172_v20 }
 0x266   : > { %v2265_v6 = vld [vmem:[#allocation2 + $0x11] ss:$2 sm:$0xf]  ;;  %v2273_v51 = vld [vmem:[#allocation2 + $0x12] ss:$2 sm:$0xf] }
 0x267   : > { %2253 = vst [vmem:[#allocation2 + $0x21] sm:$0xff] %v2245_v61  ;;  %v2279_v50 = vmax.f32 %v2265_v6, %v2273_v51  ;;  %v2257_v22 = vld [vmem:[#allocation2 + $0x10] ss:$2 sm:$0xf] }
 0x268   : > { %v2103_v57 = vpop.f32.mrf.mxu2 }
 0x269   : > { %v2136_v49 = vpop.f32.mrf.mxu3  ;;  %v2283_v40 = vmax.f32 %v2279_v50, %v2257_v22 }
 0x26a   : > { %v2137_v19 = vadd.f32 %v2136_v49, %v2103_v57 }
 0x26b   : > { %2287 = vst [vmem:[%s3829_s14 + $0x4] sm:$0xf] %v2283_v40 }
 0x26c   : > { %v2152_v38 = vmul.f32 %v3807_v47, %v2137_v19 }
 0x26e   : > { %v2165_v42 = vadd.f32 %v3813_v41, %v2152_v38  ;;  %v2267_v32 = vld [vmem:[#allocation2 + $0x21] ss:$2 sm:$0xf]  ;;  %v2275_v21 = vld [vmem:[#allocation2 + $0x22] ss:$2 sm:$0xf] }
 0x26f   : > { %v2280_v25 = vmax.f32 %v2267_v32, %v2275_v21  ;;  %v2259_v39 = vld [vmem:[#allocation2 + $0x20] ss:$2 sm:$0xf] }
 0x270   : > { %v2174_v15 = vmax.f32 %v2165_v42, 0.0  ;;  %v2105_v46 = vpop.f32.mrf.mxu2 }
 0x271   : > { %v2138_v13 = vpop.f32.mrf.mxu3  ;;  %v2284_v28 = vmax.f32 %v2280_v25, %v2259_v39 }
 0x272   : > { %v2246_v48 = vmax.f32 %v2242_v59, %v2174_v15 }
 0x273   : > { %2288 = vst [vmem:[%s3829_s14 + $0x8] sm:$0xf] %v2284_v28 }
 0x274   : > { %2254 = vst [vmem:[#allocation2 + $0x31] sm:$0xff] %v2246_v48 }
 0x27b   : > { %v2269_v47 = vld [vmem:[#allocation2 + $0x31] ss:$2 sm:$0xf]  ;;  %v2277_v41 = vld [vmem:[#allocation2 + $0x32] ss:$2 sm:$0xf] }
 0x27c   : > { %v2281_v54 = vmax.f32 %v2269_v47, %v2277_v41  ;;  %v2261_v11 = vld [vmem:[#allocation2 + $0x30] ss:$2 sm:$0xf] }
 0x27e   : > { %v2285_v9 = vmax.f32 %v2281_v54, %v2261_v11 }
 0x280   : > { %2289 = vst [vmem:[%s3829_s14 + $0xc] sm:$0xf] %v2285_v9 }
 0x281   : > { %2712 = shalt.err (!%p2709_p5)
}
 0x282   : > { %s2773_s12 = smov 4  }
 0x283   : > { %2613 = dma.vmem_to_hbm [thread:$0]  (%p2839_p4), %s2306_s29, 256, %s2308_s30, %s2291_s5, %s2768_s11, %s2768_s11, %s2773_s12  }
 0x284 PF: > { %p2619_p6 = scmp.ge.s32.totalorder %s2763_s20, 2  ;;  %s2322_s14 = sand.u32 1, %s2743_s15  }
 0x285   : > { %s2323_s21 = scalar_lea.sflag [#allocation4], %s2322_s14 }
 0x286   : > { %p2616_p7 = pnand %p2619_p6, %p2846_p8 }
 0x288   : > { %p2617_p9 = pneg %p2616_p7 }
 0x28a   : > { %2738 = dma.done.wait (%p2617_p9), %s2323_s21, 256  }
 0x28b   : > { %2740 = vsyncadd (%p2617_p9), %s2323_s21, 4294967040  ;;  %s17_s20 = sadd.s32 1, %s2763_s20   ;;  %s3887_s15 = smov %s2747_s16 }
 0x28c   : > { %p14_p10 = scmp.ge.s32.totalorder %s17_s20, 4   ;;  %s3888_s16 = smov %s2751_s17 }
 0x28d   : > { %s3889_s17 = smov %s2852_s28  ;;  %s3890_s18 = smov %s2759_s19 }
 0x28e   : > { %s3891_s19 = smov %s3893_s23  ;;  %16 = sbr.rel (!%p14_p10) target bundleno = 4 (0x4), region = 86 }
 0x293   :  { %2329 = vsyncpa [#allocation4], 1 }
 0x294   :  { %2331 = vsyncpa [#allocation4 + $0x1], 1 }

</bundles_post_ra>
